<compile_context>
chip_gen: v7x
topology: tpu7x:2x2x1
jax: 0.10.0
libtpu: 0.0.40
codegen_flags: <defaults>
</compile_context>

<pallas_src>
import jax
import jax.numpy as jnp
from jax.experimental import pallas as pl
from jax.experimental.pallas import tpu as pltpu

# ---- MultiBoxLoss hyper-parameters (RetinaFace defaults) --------------------
NUM_CLASSES = 2
OVERLAP_THRESH = 0.35
NEGPOS_RATIO = 7
VARIANCES = (0.1, 0.2)

TP = 128  # prior-axis tile (lane-dense, multiple of 128)


# =============================== Pallas kernels ==============================
def iou_kernel(truths_ref, priors_t_ref, out_ref):
    """Jaccard IoU between one image's GT boxes and a 128-wide tile of priors."""
    t = truths_ref[0]              # (num_obj, 4)  point-form GT boxes
    p = priors_t_ref[...]          # (4, TP)       point-form priors, transposed
    ax1, ay1, ax2, ay2 = t[:, 0:1], t[:, 1:2], t[:, 2:3], t[:, 3:4]   # (num_obj, 1)
    bx1, by1, bx2, by2 = p[0:1, :], p[1:2, :], p[2:3, :], p[3:4, :]   # (1, TP)
    iw = jnp.maximum(jnp.minimum(ax2, bx2) - jnp.maximum(ax1, bx1), 0.0)
    ih = jnp.maximum(jnp.minimum(ay2, by2) - jnp.maximum(ay1, by1), 0.0)
    inter = iw * ih                                   # (num_obj, TP)
    area_a = (ax2 - ax1) * (ay2 - ay1)                # (num_obj, 1)
    area_b = (bx2 - bx1) * (by2 - by1)                # (1, TP)
    out_ref[0] = inter / (area_a + area_b - inter)


def prior_loss_kernel(labels_ref, conf_ref, locp_ref, loct_ref, lmp_ref, lmt_ref,
                      ce_ref, locl_ref, lml_ref):
    """Fused per-prior losses for a 128-wide tile of priors of one image."""
    labels = labels_ref[0]                        # (1, TP) int32 matched conf_t
    pos = labels != 0                              # positives incl. label -1 faces
    pos1 = labels > 0                              # positives with landmarks
    pos_f = pos.astype(jnp.float32)
    pos1_f = pos1.astype(jnp.float32)
    tgt = pos.astype(jnp.int32)                    # binarized conf_t (0 / 1)

    # softmax cross-entropy per prior: logsumexp(conf) - conf[target]
    conf = conf_ref[...]                           # (1, TP, C)
    row_max = jnp.max(conf, axis=-1, keepdims=True)
    lse = jnp.log(jnp.sum(jnp.exp(conf - row_max), axis=-1)) + row_max[..., 0]
    cls = jax.lax.broadcasted_iota(jnp.int32, conf.shape, 2)
    onehot = (cls == tgt[:, :, None]).astype(jnp.float32)
    gathered = jnp.sum(conf * onehot, axis=-1)     # (1, TP)
    ce_ref[0] = lse - gathered

    def smooth_l1(d):
        ad = jnp.abs(d)
        return jnp.where(ad < 1.0, 0.5 * d * d, ad - 0.5)

    dl = locp_ref[...] - loct_ref[...]             # (1, TP, 4)
    locl_ref[0] = jnp.sum(smooth_l1(dl), axis=-1) * pos_f

    dm = lmp_ref[...] - lmt_ref[...]               # (1, TP, 10)
    lml_ref[0] = jnp.sum(smooth_l1(dm), axis=-1) * pos1_f


# ============================== kernel wrappers ==============================
def pairwise_iou(truths_b, priors_pf):
    num, num_obj, _ = truths_b.shape
    np_ = priors_pf.shape[0]
    assert np_ % TP == 0
    priors_t = jnp.transpose(priors_pf)                       # (4, NP)
    return pl.pallas_call(
        iou_kernel,
        out_shape=jax.ShapeDtypeStruct((num, num_obj, np_), jnp.float32),
        grid=(num, np_ // TP),
        in_specs=[
            pl.BlockSpec((1, num_obj, 4), lambda b, j: (b, 0, 0)),
            pl.BlockSpec((4, TP), lambda b, j: (0, j)),
        ],
        out_specs=pl.BlockSpec((1, num_obj, TP), lambda b, j: (b, 0, j)),
        compiler_params=pltpu.CompilerParams(
            dimension_semantics=("parallel", "parallel")),
    )(truths_b, priors_t)


def per_prior_losses(conf_t, conf_data, loc_data, loc_t, landm_data, landm_t):
    num, np_, c = conf_data.shape
    assert np_ % TP == 0
    labels3 = conf_t.reshape(num, 1, np_).astype(jnp.int32)
    row_spec = pl.BlockSpec((1, 1, TP), lambda b, j: (b, 0, j))
    ce, locl, lml = pl.pallas_call(
        prior_loss_kernel,
        out_shape=(
            jax.ShapeDtypeStruct((num, 1, np_), jnp.float32),
            jax.ShapeDtypeStruct((num, 1, np_), jnp.float32),
            jax.ShapeDtypeStruct((num, 1, np_), jnp.float32),
        ),
        grid=(num, np_ // TP),
        in_specs=[
            row_spec,
            pl.BlockSpec((1, TP, c), lambda b, j: (b, j, 0)),
            pl.BlockSpec((1, TP, 4), lambda b, j: (b, j, 0)),
            pl.BlockSpec((1, TP, 4), lambda b, j: (b, j, 0)),
            pl.BlockSpec((1, TP, 10), lambda b, j: (b, j, 0)),
            pl.BlockSpec((1, TP, 10), lambda b, j: (b, j, 0)),
        ],
        out_specs=(row_spec, row_spec, row_spec),
        compiler_params=pltpu.CompilerParams(
            dimension_semantics=("parallel", "parallel")),
    )(labels3, conf_data, loc_data, loc_t, landm_data, landm_t)
    return ce[:, 0, :], locl[:, 0, :], lml[:, 0, :]


# =========================== matching glue (XLA) =============================
def _point_form(boxes):
    return jnp.concatenate(
        [boxes[:, :2] - boxes[:, 2:] / 2, boxes[:, :2] + boxes[:, 2:] / 2], axis=1)


def _encode(matched, priors):
    g_cxcy = (matched[:, :2] + matched[:, 2:]) / 2 - priors[:, :2]
    g_cxcy = g_cxcy / (VARIANCES[0] * priors[:, 2:])
    g_wh = (matched[:, 2:] - matched[:, :2]) / priors[:, 2:]
    g_wh = jnp.log(g_wh) / VARIANCES[1]
    return jnp.concatenate([g_cxcy, g_wh], axis=1)


def _encode_landm(matched, priors):
    m = matched.reshape(-1, 5, 2)
    g_x = (m[:, :, 0] - priors[:, None, 0]) / (VARIANCES[0] * priors[:, None, 2])
    g_y = (m[:, :, 1] - priors[:, None, 1]) / (VARIANCES[0] * priors[:, None, 3])
    return jnp.stack([g_x, g_y], axis=2).reshape(-1, 10)


def _match_batch(overlaps, truths_b, labels_b, landms_b, priors):
    """Per-image GT/prior matching (torch `match`), vmapped over the batch."""
    # TODO(synk): data-dependent argmax/scatter/gather matching stays in XLA;
    # there is no clean Pallas equivalent for it.
    num_obj = truths_b.shape[1]
    num_priors = priors.shape[0]

    def match_one(ov, truths, labels, landms):
        best_prior_overlap = jnp.max(ov, axis=1)              # (num_obj,)
        best_prior_idx = jnp.argmax(ov, axis=1)                # (num_obj,)
        valid_gt = best_prior_overlap >= 0.2
        any_valid = jnp.any(valid_gt)

        best_truth_overlap = jnp.max(ov, axis=0)               # (NP,)
        best_truth_idx = jnp.argmax(ov, axis=0)                 # (NP,)

        # best_truth_overlap.index_fill_(0, best_prior_idx[valid], 2)
        fill_idx = jnp.where(valid_gt, best_prior_idx, num_priors)   # OOB -> dropped
        force = jnp.zeros((num_priors,), dtype=bool).at[fill_idx].set(
            True, mode="drop")
        best_truth_overlap = jnp.where(force, 2.0, best_truth_overlap)

        # for j in range(num_obj): best_truth_idx[best_prior_idx[j]] = j (last wins)
        hit = best_prior_idx[:, None] == jnp.arange(num_priors)[None, :]
        j_sel = jnp.max(jnp.where(hit, jnp.arange(num_obj)[:, None], -1), axis=0)
        best_truth_idx = jnp.where(j_sel >= 0, j_sel, best_truth_idx)

        matches = truths[best_truth_idx]                        # (NP, 4)
        conf = labels[best_truth_idx]                           # (NP,)
        conf = jnp.where(best_truth_overlap < OVERLAP_THRESH, 0, conf)
        loc = _encode(matches, priors)
        landm = _encode_landm(landms[best_truth_idx], priors)

        # torch early-returns with loc_t = conf_t = 0 if no GT has overlap >= 0.2
        conf = jnp.where(any_valid, conf, 0)
        loc = jnp.where(any_valid, loc, 0.0)
        landm = jnp.where(any_valid, landm, 0.0)
        return loc, conf.astype(jnp.int32), landm

    return jax.vmap(match_one)(overlaps, truths_b, labels_b, landms_b)


# ============================ full forward (Pallas) ==========================
@jax.jit
def multibox_loss_pallas(loc_data, conf_data, landm_data, priors,
                         truths_b, labels_b, landms_b):
    num, num_priors, _ = loc_data.shape

    priors_pf = _point_form(priors)
    overlaps = pairwise_iou(truths_b, priors_pf)                 # Pallas kernel 1
    loc_t, conf_t, landm_t = _match_batch(overlaps, truths_b, labels_b,
                                          landms_b, priors)

    ce, loc_pp, landm_pp = per_prior_losses(                     # Pallas kernel 2
        conf_t, conf_data, loc_data, loc_t, landm_data, landm_t)

    pos = conf_t != 0
    pos1 = conf_t > 0
    loss_l_sum = jnp.sum(loc_pp)
    loss_landm_sum = jnp.sum(landm_pp)

    # Hard negative mining.
    # TODO(synk): rank-by-sort mining stays in XLA (Pallas has no sort primitive).
    loss_c_mine = jnp.where(pos, 0.0, ce)
    loss_idx = jnp.argsort(-loss_c_mine, axis=1)
    idx_rank = jnp.argsort(loss_idx, axis=1)
    num_pos = jnp.sum(pos.astype(jnp.int32), axis=1, keepdims=True)
    num_neg = jnp.minimum(NEGPOS_RATIO * num_pos, num_priors - 1)
    neg = idx_rank < num_neg
    selected = jnp.logical_or(pos, neg)
    loss_c_sum = jnp.sum(ce * selected.astype(jnp.float32))

    n = jnp.maximum(jnp.sum(num_pos).astype(jnp.float32), 1.0)
    n1 = jnp.maximum(jnp.sum(pos1.astype(jnp.int32)).astype(jnp.float32), 1.0)
    return loss_l_sum / n, loss_c_sum / n, loss_landm_sum / n1


# =========================== pure-JAX reference ==============================
def multibox_loss_reference(loc_data, conf_data, landm_data, priors,
                            truths_b, labels_b, landms_b):
    num, num_priors, _ = loc_data.shape
    priors_pf = _point_form(priors)

    def jaccard(box_a, box_b):
        max_xy = jnp.minimum(box_a[:, None, 2:], box_b[None, :, 2:])
        min_xy = jnp.maximum(box_a[:, None, :2], box_b[None, :, :2])
        inter = jnp.maximum(max_xy - min_xy, 0.0)
        inter = inter[:, :, 0] * inter[:, :, 1]
        area_a = ((box_a[:, 2] - box_a[:, 0]) * (box_a[:, 3] - box_a[:, 1]))[:, None]
        area_b = ((box_b[:, 2] - box_b[:, 0]) * (box_b[:, 3] - box_b[:, 1]))[None, :]
        return inter / (area_a + area_b - inter)

    overlaps = jax.vmap(lambda t: jaccard(t, priors_pf))(truths_b)
    loc_t, conf_t, landm_t = _match_batch(overlaps, truths_b, labels_b,
                                          landms_b, priors)

    pos1 = conf_t > 0
    n1 = jnp.maximum(jnp.sum(pos1).astype(jnp.float32), 1.0)
    dlm = landm_data - landm_t
    sl_lm = jnp.where(jnp.abs(dlm) < 1.0, 0.5 * dlm * dlm, jnp.abs(dlm) - 0.5)
    loss_landm = jnp.sum(sl_lm * pos1[..., None])

    pos = conf_t != 0
    conf_t_bin = jnp.where(pos, 1, 0)
    dl = loc_data - loc_t
    sl_l = jnp.where(jnp.abs(dl) < 1.0, 0.5 * dl * dl, jnp.abs(dl) - 0.5)
    loss_l = jnp.sum(sl_l * pos[..., None])

    batch_conf = conf_data.reshape(-1, NUM_CLASSES)
    tgt = conf_t_bin.reshape(-1)
    gathered = jnp.take_along_axis(batch_conf, tgt[:, None], axis=1)[:, 0]
    x_max = jnp.max(batch_conf)
    lse_global = jnp.log(jnp.sum(jnp.exp(batch_conf - x_max), axis=1)) + x_max
    loss_c_all = jnp.where(pos.reshape(-1), 0.0, lse_global - gathered)
    loss_c_all = loss_c_all.reshape(num, -1)
    loss_idx = jnp.argsort(-loss_c_all, axis=1)
    idx_rank = jnp.argsort(loss_idx, axis=1)
    num_pos = jnp.sum(pos.astype(jnp.int32), axis=1, keepdims=True)
    num_neg = jnp.minimum(NEGPOS_RATIO * num_pos, num_priors - 1)
    neg = idx_rank < num_neg
    selected = jnp.logical_or(pos, neg)

    row_max = jnp.max(batch_conf, axis=1, keepdims=True)
    lse_row = jnp.log(jnp.sum(jnp.exp(batch_conf - row_max), axis=1)) + row_max[:, 0]
    ce_row = (lse_row - gathered).reshape(num, -1)
    loss_c = jnp.sum(ce_row * selected.astype(jnp.float32))

    n = jnp.maximum(jnp.sum(num_pos).astype(jnp.float32), 1.0)
    return loss_l / n, loss_c / n, loss_landm / n1


# ==================================== main ===================================
if __name__ == "__main__":
    num, num_priors, num_obj = 2, 256, 4

    key = jax.random.PRNGKey(0)
    k = jax.random.split(key, 6)

    # Priors: 16x16 grid of centers, fixed 0.2x0.2 size (center-offset form).
    g = (jnp.arange(16, dtype=jnp.float32) + 0.5) / 16.0
    cy, cx = jnp.meshgrid(g, g, indexing="ij")
    priors = jnp.stack([cx.reshape(-1), cy.reshape(-1),
                        jnp.full((num_priors,), 0.2, jnp.float32),
                        jnp.full((num_priors,), 0.2, jnp.float32)], axis=1)

    # Ground truth: 4 boxes / image (point form), 5 landmarks each, labels +-1.
    centers = jax.random.uniform(k[0], (num, num_obj, 2), minval=0.25, maxval=0.75)
    sizes = jax.random.uniform(k[1], (num, num_obj, 2), minval=0.15, maxval=0.35)
    truths_b = jnp.concatenate([centers - sizes / 2, centers + sizes / 2], axis=-1)
    landms_b = jnp.clip(
        centers[:, :, None, :]
        + 0.3 * sizes[:, :, None, :] * jax.random.normal(k[2], (num, num_obj, 5, 2)),
        0.0, 1.0).reshape(num, num_obj, 10)
    labels_b = jnp.array([[1, 1, -1, 1], [1, -1, 1, 1]], dtype=jnp.int32)

    # Network predictions.
    loc_data = 0.5 * jax.random.normal(k[3], (num, num_priors, 4), jnp.float32)
    conf_data = jax.random.normal(k[4], (num, num_priors, NUM_CLASSES), jnp.float32)
    landm_data = 0.5 * jax.random.normal(k[5], (num, num_priors, 10), jnp.float32)

    out = multibox_loss_pallas(loc_data, conf_data, landm_data, priors,
                               truths_b, labels_b, landms_b)
    out = jax.block_until_ready(out)

    ref = multibox_loss_reference(loc_data, conf_data, landm_data, priors,
                                  truths_b, labels_b, landms_b)
    for name, a, b in zip(("loss_l", "loss_c", "loss_landm"), out, ref):
        assert jnp.allclose(a, b, rtol=1e-3, atol=1e-3), (
            f"{name} mismatch: pallas={float(a)} ref={float(b)}")

    print("KERNEL_OK")
</pallas_src>

<mosaic_0001>
module attributes {stable_mosaic.version = 11 : i64} {
  func.func @iou_kernel(%arg0: i32, %arg1: i32, %arg2: memref<1x4x4xf32, #tpu.memory_space<vmem>>, %arg3: memref<4x128xf32, #tpu.memory_space<vmem>>, %arg4: memref<1x4x128xf32, #tpu.memory_space<vmem>>) attributes {dimension_semantics = [#tpu.dimension_semantics<parallel>, #tpu.dimension_semantics<parallel>], iteration_bounds = array<i64: 2, 2>, scalar_prefetch = 0 : i64, scratch_operands = 0 : i64, tpu.core_type = #tpu.core_type<tc>, window_params = [{transform_indices = @transform_0, window_bounds = array<i64: 1, 4, 4>}, {transform_indices = @transform_1, window_bounds = array<i64: 4, 128>}, {transform_indices = @transform_2, window_bounds = array<i64: 1, 4, 128>}]} {
    %c0 = arith.constant 0 : index
    %c0_0 = arith.constant 0 : index
    %c0_1 = arith.constant 0 : index
    %0 = vector.load %arg2[%c0, %c0_0, %c0_1] : memref<1x4x4xf32, #tpu.memory_space<vmem>>, vector<1x4x4xf32>
    %1 = vector.shape_cast %0 : vector<1x4x4xf32> to vector<4x4xf32>
    %c0_2 = arith.constant 0 : index
    %c0_3 = arith.constant 0 : index
    %2 = vector.load %arg3[%c0_2, %c0_3] : memref<4x128xf32, #tpu.memory_space<vmem>>, vector<4x128xf32>
    %3 = vector.extract_strided_slice %1 {offsets = [0, 0], sizes = [4, 1], strides = [1, 1]} : vector<4x4xf32> to vector<4x1xf32>
    %4 = vector.extract_strided_slice %1 {offsets = [0, 1], sizes = [4, 1], strides = [1, 1]} : vector<4x4xf32> to vector<4x1xf32>
    %5 = vector.extract_strided_slice %1 {offsets = [0, 2], sizes = [4, 1], strides = [1, 1]} : vector<4x4xf32> to vector<4x1xf32>
    %6 = vector.extract_strided_slice %1 {offsets = [0, 3], sizes = [4, 1], strides = [1, 1]} : vector<4x4xf32> to vector<4x1xf32>
    %7 = vector.extract_strided_slice %2 {offsets = [0, 0], sizes = [1, 128], strides = [1, 1]} : vector<4x128xf32> to vector<1x128xf32>
    %8 = vector.extract_strided_slice %2 {offsets = [1, 0], sizes = [1, 128], strides = [1, 1]} : vector<4x128xf32> to vector<1x128xf32>
    %9 = vector.extract_strided_slice %2 {offsets = [2, 0], sizes = [1, 128], strides = [1, 1]} : vector<4x128xf32> to vector<1x128xf32>
    %10 = vector.extract_strided_slice %2 {offsets = [3, 0], sizes = [1, 128], strides = [1, 1]} : vector<4x128xf32> to vector<1x128xf32>
    %11 = vector.broadcast %5 : vector<4x1xf32> to vector<4x128xf32>
    %12 = vector.broadcast %9 : vector<1x128xf32> to vector<4x128xf32>
    %13 = arith.minimumf %11, %12 : vector<4x128xf32>
    %14 = vector.broadcast %3 : vector<4x1xf32> to vector<4x128xf32>
    %15 = vector.broadcast %7 : vector<1x128xf32> to vector<4x128xf32>
    %16 = arith.maximumf %14, %15 : vector<4x128xf32>
    %17 = arith.subf %13, %16 : vector<4x128xf32>
    %cst = arith.constant 0.000000e+00 : f32
    %18 = vector.broadcast %cst : f32 to vector<4x128xf32>
    %19 = arith.maximumf %17, %18 : vector<4x128xf32>
    %20 = vector.broadcast %6 : vector<4x1xf32> to vector<4x128xf32>
    %21 = vector.broadcast %10 : vector<1x128xf32> to vector<4x128xf32>
    %22 = arith.minimumf %20, %21 : vector<4x128xf32>
    %23 = vector.broadcast %4 : vector<4x1xf32> to vector<4x128xf32>
    %24 = vector.broadcast %8 : vector<1x128xf32> to vector<4x128xf32>
    %25 = arith.maximumf %23, %24 : vector<4x128xf32>
    %26 = arith.subf %22, %25 : vector<4x128xf32>
    %cst_4 = arith.constant 0.000000e+00 : f32
    %27 = vector.broadcast %cst_4 : f32 to vector<4x128xf32>
    %28 = arith.maximumf %26, %27 : vector<4x128xf32>
    %29 = arith.mulf %19, %28 : vector<4x128xf32>
    %30 = arith.subf %5, %3 : vector<4x1xf32>
    %31 = arith.subf %6, %4 : vector<4x1xf32>
    %32 = arith.mulf %30, %31 : vector<4x1xf32>
    %33 = arith.subf %9, %7 : vector<1x128xf32>
    %34 = arith.subf %10, %8 : vector<1x128xf32>
    %35 = arith.mulf %33, %34 : vector<1x128xf32>
    %36 = vector.broadcast %32 : vector<4x1xf32> to vector<4x128xf32>
    %37 = vector.broadcast %35 : vector<1x128xf32> to vector<4x128xf32>
    %38 = arith.addf %36, %37 : vector<4x128xf32>
    %39 = arith.subf %38, %29 : vector<4x128xf32>
    %40 = arith.divf %29, %39 : vector<4x128xf32>
    %c0_5 = arith.constant 0 : index
    %c0_6 = arith.constant 0 : index
    %c0_7 = arith.constant 0 : index
    %41 = vector.load %arg4[%c0_5, %c0_6, %c0_7] : memref<1x4x128xf32, #tpu.memory_space<vmem>>, vector<1x4x128xf32>
    %42 = vector.shape_cast %41 : vector<1x4x128xf32> to vector<4x128xf32>
    %43 = vector.shape_cast %40 : vector<4x128xf32> to vector<1x4x128xf32>
    tpu.vector_store %arg4[%c0_5, %c0_6, %c0_7], %43 {strides = array<i32>} : memref<1x4x128xf32, #tpu.memory_space<vmem>>, vector<1x4x128xf32>,
    return
  }
  func.func @transform_0(%arg0: i32, %arg1: i32) -> (i32, i32, i32) {
    %c0_i32 = arith.constant 0 : i32
    %c0_i32_0 = arith.constant 0 : i32
    %c0_i32_1 = arith.constant 0 : i32
    return %arg0, %c0_i32, %c0_i32_0 : i32, i32, i32
  }
  func.func @transform_1(%arg0: i32, %arg1: i32) -> (i32, i32) {
    %c0_i32 = arith.constant 0 : i32
    %c0_i32_0 = arith.constant 0 : i32
    return %c0_i32, %arg1 : i32, i32
  }
  func.func @transform_2(%arg0: i32, %arg1: i32) -> (i32, i32, i32) {
    %c0_i32 = arith.constant 0 : i32
    %c0_i32_0 = arith.constant 0 : i32
    return %arg0, %c0_i32, %arg1 : i32, i32, i32
  }
}

module attributes {stable_mosaic.version = 11 : i64} {
  func.func @prior_loss_kernel(%arg0: i32, %arg1: i32, %arg2: memref<1x1x128xi32, #tpu.memory_space<vmem>>, %arg3: memref<1x128x2xf32, #tpu.memory_space<vmem>>, %arg4: memref<1x128x4xf32, #tpu.memory_space<vmem>>, %arg5: memref<1x128x4xf32, #tpu.memory_space<vmem>>, %arg6: memref<1x128x10xf32, #tpu.memory_space<vmem>>, %arg7: memref<1x128x10xf32, #tpu.memory_space<vmem>>, %arg8: memref<1x1x128xf32, #tpu.memory_space<vmem>>, %arg9: memref<1x1x128xf32, #tpu.memory_space<vmem>>, %arg10: memref<1x1x128xf32, #tpu.memory_space<vmem>>) attributes {dimension_semantics = [#tpu.dimension_semantics<parallel>, #tpu.dimension_semantics<parallel>], iteration_bounds = array<i64: 2, 2>, scalar_prefetch = 0 : i64, scratch_operands = 0 : i64, tpu.core_type = #tpu.core_type<tc>, window_params = [{transform_indices = @transform_0, window_bounds = array<i64: 1, 1, 128>}, {transform_indices = @transform_1, window_bounds = array<i64: 1, 128, 2>}, {transform_indices = @transform_2, window_bounds = array<i64: 1, 128, 4>}, {transform_indices = @transform_3, window_bounds = array<i64: 1, 128, 4>}, {transform_indices = @transform_4, window_bounds = array<i64: 1, 128, 10>}, {transform_indices = @transform_5, window_bounds = array<i64: 1, 128, 10>}, {transform_indices = @transform_6, window_bounds = array<i64: 1, 1, 128>}, {transform_indices = @transform_7, window_bounds = array<i64: 1, 1, 128>}, {transform_indices = @transform_8, window_bounds = array<i64: 1, 1, 128>}]} {
    %c0 = arith.constant 0 : index
    %c0_0 = arith.constant 0 : index
    %c0_1 = arith.constant 0 : index
    %0 = vector.load %arg2[%c0, %c0_0, %c0_1] : memref<1x1x128xi32, #tpu.memory_space<vmem>>, vector<1x1x128xi32>
    %1 = vector.shape_cast %0 : vector<1x1x128xi32> to vector<1x128xi32>
    %c0_i32 = arith.constant 0 : i32
    %2 = vector.broadcast %c0_i32 : i32 to vector<1x128xi32>
    %3 = arith.cmpi ne, %1, %2 : vector<1x128xi32>
    %c0_i32_2 = arith.constant 0 : i32
    %4 = vector.broadcast %c0_i32_2 : i32 to vector<1x128xi32>
    %5 = arith.cmpi sgt, %1, %4 : vector<1x128xi32>
    %6 = arith.extui %3 : vector<1x128xi1> to vector<1x128xi32>
    %7 = arith.sitofp %6 : vector<1x128xi32> to vector<1x128xf32>
    %8 = arith.extui %5 : vector<1x128xi1> to vector<1x128xi32>
    %9 = arith.sitofp %8 : vector<1x128xi32> to vector<1x128xf32>
    %10 = arith.extui %3 : vector<1x128xi1> to vector<1x128xi32>
    %c0_3 = arith.constant 0 : index
    %c0_4 = arith.constant 0 : index
    %c0_5 = arith.constant 0 : index
    %11 = vector.load %arg3[%c0_3, %c0_4, %c0_5] : memref<1x128x2xf32, #tpu.memory_space<vmem>>, vector<1x128x2xf32>
    %cst = arith.constant dense<0xFF800000> : vector<1x128xf32>
    %12 = vector.multi_reduction <maximumf>, %11, %cst [2] : vector<1x128x2xf32> to vector<1x128xf32>
    %13 = vector.shape_cast %12 : vector<1x128xf32> to vector<1x128x1xf32>
    %14 = vector.broadcast %13 : vector<1x128x1xf32> to vector<1x128x2xf32>
    %15 = arith.subf %11, %14 : vector<1x128x2xf32>
    %16 = math.exp %15 : vector<1x128x2xf32>
    %cst_6 = arith.constant dense<0.000000e+00> : vector<1x128xf32>
    %17 = vector.multi_reduction <add>, %16, %cst_6 [2] : vector<1x128x2xf32> to vector<1x128xf32>
    %18 = math.log %17 : vector<1x128xf32>
    %19 = vector.shape_cast %13 : vector<1x128x1xf32> to vector<1x128xf32>
    %20 = arith.addf %18, %19 : vector<1x128xf32>
    %21 = tpu.iota {dimensions = array<i32: 2>} : vector<1x128x2xi32>
    %22 = vector.shape_cast %10 : vector<1x128xi32> to vector<1x128x1xi32>
    %23 = vector.broadcast %22 : vector<1x128x1xi32> to vector<1x128x2xi32>
    %24 = arith.cmpi eq, %21, %23 : vector<1x128x2xi32>
    %25 = arith.extui %24 : vector<1x128x2xi1> to vector<1x128x2xi32>
    %26 = arith.sitofp %25 : vector<1x128x2xi32> to vector<1x128x2xf32>
    %27 = arith.mulf %11, %26 : vector<1x128x2xf32>
    %cst_7 = arith.constant dense<0.000000e+00> : vector<1x128xf32>
    %28 = vector.multi_reduction <add>, %27, %cst_7 [2] : vector<1x128x2xf32> to vector<1x128xf32>
    %29 = arith.subf %20, %28 : vector<1x128xf32>
    %c0_8 = arith.constant 0 : index
    %c0_9 = arith.constant 0 : index
    %c0_10 = arith.constant 0 : index
    %30 = vector.load %arg8[%c0_8, %c0_9, %c0_10] : memref<1x1x128xf32, #tpu.memory_space<vmem>>, vector<1x1x128xf32>
    %31 = vector.shape_cast %30 : vector<1x1x128xf32> to vector<1x128xf32>
    %32 = vector.shape_cast %29 : vector<1x128xf32> to vector<1x1x128xf32>
    tpu.vector_store %arg8[%c0_8, %c0_9, %c0_10], %32 {strides = array<i32>} : memref<1x1x128xf32, #tpu.memory_space<vmem>>, vector<1x1x128xf32>,
    %c0_11 = arith.constant 0 : index
    %c0_12 = arith.constant 0 : index
    %c0_13 = arith.constant 0 : index
    %33 = vector.load %arg4[%c0_11, %c0_12, %c0_13] : memref<1x128x4xf32, #tpu.memory_space<vmem>>, vector<1x128x4xf32>
    %c0_14 = arith.constant 0 : index
    %c0_15 = arith.constant 0 : index
    %c0_16 = arith.constant 0 : index
    %34 = vector.load %arg5[%c0_14, %c0_15, %c0_16] : memref<1x128x4xf32, #tpu.memory_space<vmem>>, vector<1x128x4xf32>
    %35 = arith.subf %33, %34 : vector<1x128x4xf32>
    %36 = math.absf %35 : vector<1x128x4xf32>
    %cst_17 = arith.constant 1.000000e+00 : f32
    %37 = vector.broadcast %cst_17 : f32 to vector<1x128x4xf32>
    %38 = arith.cmpf olt, %36, %37 : vector<1x128x4xf32>
    %cst_18 = arith.constant 5.000000e-01 : f32
    %39 = vector.broadcast %cst_18 : f32 to vector<1x128x4xf32>
    %40 = arith.mulf %39, %35 : vector<1x128x4xf32>
    %41 = arith.mulf %40, %35 : vector<1x128x4xf32>
    %cst_19 = arith.constant 5.000000e-01 : f32
    %42 = vector.broadcast %cst_19 : f32 to vector<1x128x4xf32>
    %43 = arith.subf %36, %42 : vector<1x128x4xf32>
    %44 = arith.select %38, %41, %43 : vector<1x128x4xi1>, vector<1x128x4xf32>
    %cst_20 = arith.constant dense<0.000000e+00> : vector<1x128xf32>
    %45 = vector.multi_reduction <add>, %44, %cst_20 [2] : vector<1x128x4xf32> to vector<1x128xf32>
    %46 = arith.mulf %45, %7 : vector<1x128xf32>
    %c0_21 = arith.constant 0 : index
    %c0_22 = arith.constant 0 : index
    %c0_23 = arith.constant 0 : index
    %47 = vector.load %arg9[%c0_21, %c0_22, %c0_23] : memref<1x1x128xf32, #tpu.memory_space<vmem>>, vector<1x1x128xf32>
    %48 = vector.shape_cast %47 : vector<1x1x128xf32> to vector<1x128xf32>
    %49 = vector.shape_cast %46 : vector<1x128xf32> to vector<1x1x128xf32>
    tpu.vector_store %arg9[%c0_21, %c0_22, %c0_23], %49 {strides = array<i32>} : memref<1x1x128xf32, #tpu.memory_space<vmem>>, vector<1x1x128xf32>,
    %c0_24 = arith.constant 0 : index
    %c0_25 = arith.constant 0 : index
    %c0_26 = arith.constant 0 : index
    %50 = vector.load %arg6[%c0_24, %c0_25, %c0_26] : memref<1x128x10xf32, #tpu.memory_space<vmem>>, vector<1x128x10xf32>
    %c0_27 = arith.constant 0 : index
    %c0_28 = arith.constant 0 : index
    %c0_29 = arith.constant 0 : index
    %51 = vector.load %arg7[%c0_27, %c0_28, %c0_29] : memref<1x128x10xf32, #tpu.memory_space<vmem>>, vector<1x128x10xf32>
    %52 = arith.subf %50, %51 : vector<1x128x10xf32>
    %53 = math.absf %52 : vector<1x128x10xf32>
    %cst_30 = arith.constant 1.000000e+00 : f32
    %54 = vector.broadcast %cst_30 : f32 to vector<1x128x10xf32>
    %55 = arith.cmpf olt, %53, %54 : vector<1x128x10xf32>
    %cst_31 = arith.constant 5.000000e-01 : f32
    %56 = vector.broadcast %cst_31 : f32 to vector<1x128x10xf32>
    %57 = arith.mulf %56, %52 : vector<1x128x10xf32>
    %58 = arith.mulf %57, %52 : vector<1x128x10xf32>
    %cst_32 = arith.constant 5.000000e-01 : f32
    %59 = vector.broadcast %cst_32 : f32 to vector<1x128x10xf32>
    %60 = arith.subf %53, %59 : vector<1x128x10xf32>
    %61 = arith.select %55, %58, %60 : vector<1x128x10xi1>, vector<1x128x10xf32>
    %cst_33 = arith.constant dense<0.000000e+00> : vector<1x128xf32>
    %62 = vector.multi_reduction <add>, %61, %cst_33 [2] : vector<1x128x10xf32> to vector<1x128xf32>
    %63 = arith.mulf %62, %9 : vector<1x128xf32>
    %c0_34 = arith.constant 0 : index
    %c0_35 = arith.constant 0 : index
    %c0_36 = arith.constant 0 : index
    %64 = vector.load %arg10[%c0_34, %c0_35, %c0_36] : memref<1x1x128xf32, #tpu.memory_space<vmem>>, vector<1x1x128xf32>
    %65 = vector.shape_cast %64 : vector<1x1x128xf32> to vector<1x128xf32>
    %66 = vector.shape_cast %63 : vector<1x128xf32> to vector<1x1x128xf32>
    tpu.vector_store %arg10[%c0_34, %c0_35, %c0_36], %66 {strides = array<i32>} : memref<1x1x128xf32, #tpu.memory_space<vmem>>, vector<1x1x128xf32>,
    return
  }
  func.func @transform_0(%arg0: i32, %arg1: i32) -> (i32, i32, i32) {
    %c0_i32 = arith.constant 0 : i32
    %c0_i32_0 = arith.constant 0 : i32
    return %arg0, %c0_i32, %arg1 : i32, i32, i32
  }
  func.func @transform_1(%arg0: i32, %arg1: i32) -> (i32, i32, i32) {
    %c0_i32 = arith.constant 0 : i32
    %c0_i32_0 = arith.constant 0 : i32
    return %arg0, %arg1, %c0_i32 : i32, i32, i32
  }
  func.func @transform_2(%arg0: i32, %arg1: i32) -> (i32, i32, i32) {
    %c0_i32 = arith.constant 0 : i32
    %c0_i32_0 = arith.constant 0 : i32
    return %arg0, %arg1, %c0_i32 : i32, i32, i32
  }
  func.func @transform_3(%arg0: i32, %arg1: i32) -> (i32, i32, i32) {
    %c0_i32 = arith.constant 0 : i32
    %c0_i32_0 = arith.constant 0 : i32
    return %arg0, %arg1, %c0_i32 : i32, i32, i32
  }
  func.func @transform_4(%arg0: i32, %arg1: i32) -> (i32, i32, i32) {
    %c0_i32 = arith.constant 0 : i32
    %c0_i32_0 = arith.constant 0 : i32
    return %arg0, %arg1, %c0_i32 : i32, i32, i32
  }
  func.func @transform_5(%arg0: i32, %arg1: i32) -> (i32, i32, i32) {
    %c0_i32 = arith.constant 0 : i32
    %c0_i32_0 = arith.constant 0 : i32
    return %arg0, %arg1, %c0_i32 : i32, i32, i32
  }
  func.func @transform_6(%arg0: i32, %arg1: i32) -> (i32, i32, i32) {
    %c0_i32 = arith.constant 0 : i32
    %c0_i32_0 = arith.constant 0 : i32
    return %arg0, %c0_i32, %arg1 : i32, i32, i32
  }
  func.func @transform_7(%arg0: i32, %arg1: i32) -> (i32, i32, i32) {
    %c0_i32 = arith.constant 0 : i32
    %c0_i32_0 = arith.constant 0 : i32
    return %arg0, %c0_i32, %arg1 : i32, i32, i32
  }
  func.func @transform_8(%arg0: i32, %arg1: i32) -> (i32, i32, i32) {
    %c0_i32 = arith.constant 0 : i32
    %c0_i32_0 = arith.constant 0 : i32
    return %arg0, %c0_i32, %arg1 : i32, i32, i32
  }
}

</mosaic_0001>

<bundles_post_ra>
// kernel: multibox_loss_pallas.2
= control target key start
LH: loop header
LB: loop body
LE: loop exit
PB: predicated region body
PF: predicated region fallthrough
CT: control target
= control target key end

     0   :  { %s471_s9 = smov 0   ;;  %s473_s10 = smov 0   ;;  %s537_s0 = inlined_call_operand.vmem [shape: f32[2,4,4], index: 0, kind: input, shape index: {}]   ;;  %s538_s1 = inlined_call_operand.vmem [shape: f32[4,256], index: 1, kind: input, shape index: {}]   ;;  %s539_s2 = inlined_call_operand.vmem [shape: f32[2,4,256], index: 2, kind: output, shape index: {}]  }
   0x1   :  { %s475_s11 = smov 0   ;;  %s477_s12 = smov 0  }
   0x2   :  { %s479_s13 = smov 0  }
   0x3 LB: > { %s21_s14 = sadd.s32 1, %s440_s11  ;;  %s24_s15 = sadd.s32 1, %s444_s12  ;;  %s448_s13 = sphi %s479_s13, %s12_s13   ;;  %s444_s12 = sphi %s477_s12, %s543_s12   ;;  %s440_s11 = sphi %s475_s11, %s542_s11   ;;  %s436_s10 = sphi %s473_s10, %s541_s10   ;;  %s432_s9 = sphi %s471_s9, %s540_s9  }
   0x4   : > { %p22_p0 = scmp.ge.s32.totalorder %s21_s14, 2  ;;  %p349_p1 = scmp.ge.s32.totalorder %s448_s13, 1 }
   0x5   : > { %p134_p2 = scmp.lt.s32.totalorder %s448_s13, 5 }
   0x6   : > { %s545_s14 = smov (%p22_p0, %s21_s14), 0  ;;  %s547_s15 = smov (!%p22_p0, %s24_s15), %s444_s12 }
   0x7   : > { %p135_p3 = pnand %p349_p1, %p134_p2  ;;  %p26_p4 = scmp.ge.s32.totalorder %s547_s15, 2 }
   0x8   : > { %p162_p5 = scmp.lt.s32.totalorder (!%p135_p3), %s436_s10, 1  ;;  %v450_v0 = vmov (!%p135_p3), 2   ;;  %v451_v1 = vmov (!%p135_p3), 3   ;;  %s452_s20 = smov (!%p135_p3), 2   ;;  %v453_v3 = vmov (!%p135_p3), 0   ;;  %v454_v4 = vmov (!%p135_p3), 1  }
   0x9   : > { %s549_s15 = smov (%p26_p4, %s547_s15), 0  ;;  %138 = sbr.rel (%p135_p3) target bundleno = 400 (0x190), region = 28 }
   0xa   : > { %402 = vset.pattern.permute.xlu1 (!%p135_p3), %v450_v0  ;;  %404 = vset.pattern.permute.xlu0 (!%p135_p3), %v451_v1  ;;  %s455_s21 = smov (!%p135_p3), 127   ;;  %p166_p6 = scmp.lt.s32.totalorder (!%p135_p3), %s432_s9, 1  ;;  %v185_v9 = vlaneseq (!%p135_p3) }
   0xc   : > { %v186_v11 = vshrl.u32 (!%p135_p3), %v185_v9, 7 }
   0xe   : > { %v187_v13 = vsub.s32 (!%p135_p3), 2, %v186_v11  ;;  %v196_v15 = vsub.s32 (!%p135_p3), 0, %v186_v11  ;;  %v216_v16 = vsub.s32 (!%p135_p3), 1, %v186_v11  ;;  %v207_v17 = vsub.s32 (!%p135_p3), 3, %v186_v11 }
  0x10   : > { %s551_s10 = smov (!%p162_p5, %s436_s10), 1  ;;  %s553_s9 = smov (!%p166_p6, %s432_s9), 1 }
  0x11   : > { %s350_s16 = sshll.u32 %s551_s10, 2  ;;  %s351_s22 = sshll.u32 %s553_s9, 2 }
  0x12   : > { %s165_s19 = scalar_lea.vmem %s537_s0, %s350_s16  ;;  %s169_s25 = scalar_lea.vmem %s538_s1, %s351_s22 }
  0x13   : > { %v178_v2 = vld [vmem:[%s165_s19] sm:$0xf]  ;;  %s352_s26 = sshll.u32 %s551_s10, 1 }
  0x14   : > { %222 = vrot.lane.b32.xlu0 %v178_v2, %s452_s20  ;;  %182 = vperm.xlu1 %402, %v178_v2   ;;  %v179_v12 = vld [vmem:[%s169_s25] sm:$0xf]  ;;  %s175_s27 = sadd.s32 %s352_s26, %s553_s9 }
  0x15   : > { %v232_v18 = vrot.slane %v179_v12, 6  ;;  %v188_v19 = vrot.slane %v179_v12, %v187_v13  ;;  %v197_v20 = vrot.slane %v179_v12, %v196_v15  ;;  %v217_v21 = vrot.slane %v179_v12, %v216_v16  ;;  %s353_s28 = sshll.u32 %s175_s27, 2 }
  0x16   : > { %v208_v22 = vrot.slane %v179_v12, %v207_v17  ;;  %s177_s3 = scalar_lea.vmem %s539_s2, %s353_s28 }
  0x17   : > { %v234_v23 = vsub.f32 %v179_v12, %v232_v18 }
  0x18   : > { %403 = vset.pattern.permute.xlu1 %v453_v3 }
  0x19   : > { %191 = vperm.xlu1 %403, %v178_v2   ;;  %v236_v30 = vrot.slane %v234_v23, 1 }
  0x1b   : > { %v238_v33 = vmul.f32 %v236_v30, %v234_v23 }
  0x1d   : > { %405 = vset.pattern.permute.xlu1 %v454_v4  ;;  %v247_v36 = vrot.slane %v238_v33, %v187_v13 }
  0x1e   : > { %211 = vperm.xlu1 %405, %v178_v2  }
  0x22   : > { %406 = vset.pattern.permute.xlu1 %v450_v0 }
  0x86   : > { %v223_v5 = vpop.permute.xlu0 %222 }
  0x87   : > { %v225_v6 = vsub.f32 %v178_v2, %v223_v5 }
  0x89   : > { %227 = vrot.lane.b32.xlu0 %v225_v6, %s455_s21 }
  0x8d   : > { %202 = vperm.xlu0 %404, %v178_v2  }
  0x91   : > { %407 = vset.pattern.permute.xlu0 %v450_v0 }
  0x93   : > { %v183_v10 = vpop.permute.xlu1 %182 }
  0x94   : > { %v189_v26 = vmin.f32 %v183_v10, %v188_v19 }
  0x98   : > { %v192_v14 = vpop.permute.xlu1 %191 }
  0x99   : > { %v198_v27 = vmax.f32 %v192_v14, %v197_v20 }
  0x9b   : > { %v199_v31 = vsub.f32 %v189_v26, %v198_v27 }
  0x9d   : > { %v212_v24 = vpop.permute.xlu1 %211  ;;  %v200_v34 = vmax.f32 %v199_v31, 0.0 }
  0x9e   : > { %v218_v28 = vmax.f32 %v212_v24, %v217_v21 }
  0xfb   : > { %v228_v7 = vpop.permute.xlu0 %227 }
  0xfc   : > { %v230_v8 = vmul.f32 %v228_v7, %v225_v6 }
  0xfe   : > { %241 = vperm.xlu1 %406, %v230_v8  }
 0x10c   : > { %v203_v25 = vpop.permute.xlu0 %202 }
 0x10d   : > { %v209_v29 = vmin.f32 %v203_v25, %v208_v22 }
 0x10f   : > { %v219_v32 = vsub.f32 %v209_v29, %v218_v28 }
 0x111   : > { %v220_v35 = vmax.f32 %v219_v32, 0.0 }
 0x113   : > { %v221_v38 = vmul.f32 %v220_v35, %v200_v34 }
 0x17d   : > { %v242_v37 = vpop.permute.xlu1 %241 }
 0x17e   : > { %v248_v39 = vadd.f32 %v247_v36, %v242_v37 }
 0x180   : > { %v249_v40 = vsub.f32 %v248_v39, %v221_v38 }
 0x182   : > { %408 = vrcp.f32 %v249_v40 }
 0x18c   : > { %v409_v41 = vpop.eup %408 }
 0x18d   : > { %v251_v42 = vmul.f32 %v409_v41, %v221_v38 }
 0x18f   : > { %252 = vst [vmem:[%s177_s3] sm:$0xf] %v251_v42 }
 0x190 PF: > { %s12_s13 = sadd.s32 1, %s448_s13   ;;  %s540_s9 = smov %s440_s11 }
 0x191   : > { %p9_p7 = scmp.ge.s32.totalorder %s12_s13, 6   ;;  %s541_s10 = smov %s444_s12 }
 0x192   : > { %s542_s11 = smov %s545_s14  ;;  %s543_s12 = smov %s549_s15 }
 0x193   :  { %11 = sbr.rel (!%p9_p7) target bundleno = 3 (0x3), region = 61 }

// kernel: multibox_loss_pallas.3
= control target key start
LH: loop header
LB: loop body
LE: loop exit
PB: predicated region body
PF: predicated region fallthrough
CT: control target
= control target key end

     0   :  { %s2485_s27 = smov 0   ;;  %s2487_s28 = smov 0   ;;  %s3442_s0 = inlined_call_operand.vmem [shape: s32[2,1,256], index: 0, kind: input, shape index: {}]   ;;  %s3443_s1 = inlined_call_operand.vmem [shape: f32[2,256,2], index: 1, kind: input, shape index: {}]   ;;  %s3444_s2 = inlined_call_operand.vmem [shape: f32[2,256,4], index: 2, kind: input, shape index: {}]   ;;  %s3445_s3 = inlined_call_operand.vmem [shape: f32[2,256,4], index: 3, kind: input, shape index: {}]   ;;  %s3446_s4 = inlined_call_operand.vmem [shape: f32[2,256,10], index: 4, kind: input, shape index: {}]   ;;  %s3447_s5 = inlined_call_operand.vmem [shape: f32[2,256,10], index: 5, kind: input, shape index: {}]   ;;  %s3448_s6 = inlined_call_operand.vmem [shape: f32[2,1,256], index: 6, kind: output, shape index: {0}]   ;;  %s3449_s7 = inlined_call_operand.vmem [shape: f32[2,1,256], index: 7, kind: output, shape index: {1}]   ;;  %s3450_s8 = inlined_call_operand.vmem [shape: f32[2,1,256], index: 8, kind: output, shape index: {2}]  }
   0x1   :  { %s2489_s29 = smov 0   ;;  %s2491_s30 = smov 0  }
   0x2   :  { %s2493_s9 = smov 0  }
   0x3 LB: > { %s28_s10 = sadd.s32 1, %s2428_s29  ;;  %s31_s11 = sadd.s32 1, %s2432_s30  ;;  %s2436_s9 = sphi %s2493_s9, %s19_s9   ;;  %s2432_s30 = sphi %s2491_s30, %s3547_s30   ;;  %s2428_s29 = sphi %s2489_s29, %s3546_s29   ;;  %s2424_s28 = sphi %s2487_s28, %s3545_s28   ;;  %s2420_s27 = sphi %s2485_s27, %s3544_s27  }
   0x4   : > { %p29_p0 = scmp.ge.s32.totalorder %s28_s10, 2  ;;  %p2218_p1 = scmp.ge.s32.totalorder %s2436_s9, 1 }
   0x5   : > { %p374_p2 = scmp.lt.s32.totalorder %s2436_s9, 5 }
   0x6   : > { %s3549_s10 = smov (%p29_p0, %s28_s10), 0  ;;  %s3551_s11 = smov (!%p29_p0, %s31_s11), %s2432_s30 }
   0x7   : > { %p375_p3 = pnand %p2218_p1, %p374_p2  ;;  %p33_p4 = scmp.ge.s32.totalorder %s3551_s11, 2 }
   0x9   : > { %s3553_s11 = smov (%p33_p4, %s3551_s11), 0  ;;  %378 = sbr.rel (%p375_p3) target bundleno = 776 (0x308), region = 44 }
  0x10   : > { %p471_p5 = scmp.lt.s32.totalorder %s2424_s28, 1  ;;  %p473_p6 = scmp.lt.s32.totalorder %s2420_s27, 1  ;;  %v2438_v0 = vmov 0   ;;  %v765_v1 = vlaneseq  ;;  %vm572_vm0 = vcmask 15360   ;;  %v2439_v6 = vmov 0.0  }
  0x11   : > { %s2220_s12 = sshll.u32 %s2420_s27, 4  ;;  %2333 = vset.pattern.permute.xlu1 %v2438_v0  ;;  %2332 = vset.pattern.permute.xlu0 %v2438_v0 }
  0x12   : > { %s3555_s28 = smov (!%p471_p5, %s2424_s28), 1  ;;  %s3557_s27 = smov (!%p473_p6, %s2420_s27), 1  ;;  %v2518_v2 = vshrl.u32 %v765_v1, 7  ;;  %v2655_v59 = vand.u32 127, %v765_v1 }
  0x13   : > { %p481_p7 = scmp.lt.s32.totalorder %s2220_s12, 31  ;;  %s2221_s13 = sshll.u32 %s3555_s28, 5 }
  0x14   : > { %s2219_s14 = sshll.u32 %s3555_s28, 1  ;;  %v769_v4 = vsub.s32 0, %v2518_v2 }
  0x15   : > { %s3559_s12 = smov (!%p481_p7, %s2220_s12), 31  ;;  %s2520_s15 = sadd.s32 %s2219_s14, %s3557_s27 }
  0x16   : > { %s484_s16 = sadd.s32 %s2221_s13, %s3559_s12  ;;  %s477_s19 = scalar_lea.vmem %s3442_s0, %s2520_s15 }
  0x17   : > { %s2526_s20 = sshll.u32 %s484_s16, 3  ;;  %v549_v3 = vld [vmem:[%s477_s19] sm:$0x1]  ;;  %s534_s22 = scalar_lea.vmem %s3448_s6, %s2520_s15 }
  0x18   : > { %s2532_s23 = scalar_lea.vmem %s3443_s1, %s2526_s20  ;;  %vm550_vm1 = vcmp.ne.s32.totalorder %v549_v3, 0  ;;  %vm551_vm2 = vcmp.gt.s32.totalorder %v549_v3, 0  ;;  %s2753_s26 = scalar_lea.vmem %s3444_s2, %s2526_s20 }
  0x19   : > { %v2536_v5 = vld [vmem:[%s2532_s23 + $0x10] sm:$0xff]  ;;  %v2238_v7 = vsel %vm550_vm1, 1.0, %v2439_v6  ;;  %v2239_v8 = vsel %vm551_vm2, 1.0, %v2439_v6  ;;  %v2542_v9 = vld [vmem:[%s2532_s23] sm:$0xff]  ;;  %v2545_v10 = vld [vmem:[%s2532_s23 + $0x18] sm:$0xff]  ;;  %v552_v42 = vsel %vm550_vm1, 1, %v2438_v0  ;;  %s2759_s12 = scalar_lea.vmem %s3445_s3, %s2526_s20  ;;  %s2936_s16 = scalar_lea.vmem %s3446_s4, %s2526_s20 }
  0x1a   : > { %v579_v11 = vsel %vm572_vm0, %v2536_v5, -inf  ;;  %v2549_v12 = vrot.slane %v2238_v7, %v769_v4  ;;  %v2551_v13 = vrot.slane %v2239_v8, %v769_v4  ;;  %v2554_v14 = vld [vmem:[%s2532_s23 + $0x8] sm:$0xff]  ;;  %v573_v15 = vsel %vm572_vm0, %v2542_v9, -inf  ;;  %v2566_v19 = vld [vmem:[%s2532_s23 + $0x20] sm:$0xff]  ;;  %v2573_v22 = vld [vmem:[%s2532_s23 + $0x38] sm:$0xff]  ;;  %s2942_s19 = scalar_lea.vmem %s3447_s5, %s2526_s20  ;;  %s541_s25 = scalar_lea.vmem %s3449_s7, %s2520_s15 }
  0x1b   : > { %580 = vmax.xlane.f32.xlu1 %v579_v11  ;;  %574 = vmax.xlane.f32.xlu0 %v573_v15  ;;  %v582_v16 = vsel %vm572_vm0, %v2545_v10, -inf  ;;  %v576_v17 = vsel %vm572_vm0, %v2554_v14, -inf  ;;  %v2563_v18 = vld [vmem:[%s2532_s23 + $0x28] sm:$0xff]  ;;  %v585_v21 = vsel %vm572_vm0, %v2566_v19, -inf  ;;  %v2576_v23 = vld [vmem:[%s2532_s23 + $0x30] sm:$0xff]  ;;  %v594_v24 = vsel %vm572_vm0, %v2573_v22, -inf  ;;  %s548_s28 = scalar_lea.vmem %s3450_s8, %s2520_s15 }
  0x1c   : > { %3458 = vst [vmem:[#allocation2_spill] sm:$0xff] %v2551_v13  ;;  %v588_v20 = vsel %vm572_vm0, %v2563_v18, -inf  ;;  %v591_v25 = vsel %vm572_vm0, %v2576_v23, -inf  ;;  %v2583_v26 = vld [vmem:[%s2532_s23 + $0x48] sm:$0xff]  ;;  %v2586_v27 = vld [vmem:[%s2532_s23 + $0x40] sm:$0xff]  ;;  %v2593_v30 = vld [vmem:[%s2532_s23 + $0x58] sm:$0xff]  ;;  %v770_v43 = vrot.slane %v552_v42, %v769_v4 }
  0x1d   : > { %v600_v28 = vsel %vm572_vm0, %v2583_v26, -inf  ;;  %v597_v29 = vsel %vm572_vm0, %v2586_v27, -inf  ;;  %v2596_v31 = vld [vmem:[%s2532_s23 + $0x50] sm:$0xff]  ;;  %v606_v32 = vsel %vm572_vm0, %v2593_v30, -inf  ;;  %v2603_v34 = vld [vmem:[%s2532_s23 + $0x68] sm:$0xff]  ;;  %v2606_v35 = vld [vmem:[%s2532_s23 + $0x60] sm:$0xff] }
  0x1e   : > { %v603_v33 = vsel %vm572_vm0, %v2596_v31, -inf  ;;  %v612_v36 = vsel %vm572_vm0, %v2603_v34, -inf  ;;  %v609_v37 = vsel %vm572_vm0, %v2606_v35, -inf  ;;  %v2613_v38 = vld [vmem:[%s2532_s23 + $0x78] sm:$0xff]  ;;  %v2616_v39 = vld [vmem:[%s2532_s23 + $0x70] sm:$0xff] }
  0x1f   : > { %583 = vmax.xlane.f32.xlu1 %v582_v16  ;;  %577 = vmax.xlane.f32.xlu0 %v576_v17  ;;  %v618_v40 = vsel %vm572_vm0, %v2613_v38, -inf  ;;  %v615_v41 = vsel %vm572_vm0, %v2616_v39, -inf }
  0x23   : > { %589 = vmax.xlane.f32.xlu1 %v588_v20  ;;  %586 = vmax.xlane.f32.xlu0 %v585_v21 }
  0x27   : > { %595 = vmax.xlane.f32.xlu1 %v594_v24  ;;  %592 = vmax.xlane.f32.xlu0 %v591_v25 }
  0x2b   : > { %601 = vmax.xlane.f32.xlu1 %v600_v28  ;;  %598 = vmax.xlane.f32.xlu0 %v597_v29 }
  0x2f   : > { %607 = vmax.xlane.f32.xlu1 %v606_v32  ;;  %604 = vmax.xlane.f32.xlu0 %v603_v33 }
  0x33   : > { %613 = vmax.xlane.f32.xlu1 %v612_v36  ;;  %610 = vmax.xlane.f32.xlu0 %v609_v37 }
  0x37   : > { %619 = vmax.xlane.f32.xlu1 %v618_v40  ;;  %616 = vmax.xlane.f32.xlu0 %v615_v41 }
  0x48   : > { %776 = vbcast.lane.b32.xlu1 %v770_v43, 264 }
  0x4c   : > { %780 = vbcast.lane.b32.xlu1 %v770_v43, 272 }
  0x4d   : > { %772 = vbcast.lane.b32.xlu0 %v770_v43, 256 }
  0x50   : > { %784 = vbcast.lane.b32.xlu1 %v770_v43, 280 }
  0x51   : > { %788 = vbcast.lane.b32.xlu0 %v770_v43, 288 }
  0x54   : > { %792 = vbcast.lane.b32.xlu1 %v770_v43, 296 }
  0x55   : > { %796 = vbcast.lane.b32.xlu0 %v770_v43, 304 }
  0x58   : > { %800 = vbcast.lane.b32.xlu1 %v770_v43, 312 }
  0x59   : > { %804 = vbcast.lane.b32.xlu0 %v770_v43, 320 }
  0x5c   : > { %808 = vbcast.lane.b32.xlu1 %v770_v43, 328 }
  0x5d   : > { %812 = vbcast.lane.b32.xlu0 %v770_v43, 336 }
  0x60   : > { %816 = vbcast.lane.b32.xlu1 %v770_v43, 344 }
  0x61   : > { %820 = vbcast.lane.b32.xlu0 %v770_v43, 352 }
  0x64   : > { %824 = vbcast.lane.b32.xlu1 %v770_v43, 360 }
  0x65   : > { %828 = vbcast.lane.b32.xlu0 %v770_v43, 368 }
  0x68   : > { %832 = vbcast.lane.b32.xlu1 %v770_v43, 376 }
  0xa8   : > { %v2624_v44 = vpop.xlane.xlu1 %580  ;;  %v2626_v45 = vpop.xlane.xlu0 %574 }
  0xa9   : > { %v621_v41 = vsub.f32 %v2542_v9, %v2626_v45 }
  0xac   : > { %v2628_v46 = vpop.xlane.xlu1 %583  ;;  %v2630_v47 = vpop.xlane.xlu0 %577 }
  0xad   : > { %v622_v43 = vsub.f32 %v2554_v14, %v2630_v47 }
  0xb0   : > { %v2632_v48 = vpop.xlane.xlu1 %589  ;;  %v2634_v49 = vpop.xlane.xlu0 %586 }
  0xb4   : > { %v2636_v50 = vpop.xlane.xlu1 %595  ;;  %v2638_v51 = vpop.xlane.xlu0 %592 }
  0xb8   : > { %v2640_v52 = vpop.xlane.xlu1 %601  ;;  %v2642_v53 = vpop.xlane.xlu0 %598 }
  0xbc   : > { %v2644_v54 = vpop.xlane.xlu1 %607  ;;  %v2646_v55 = vpop.xlane.xlu0 %604 }
  0xbd   : > { %3459 = vst [vmem:[#allocation3_spill] sm:$0xff] %v2644_v54  ;;  %3460 = vst [vmem:[#allocation4_spill] sm:$0xff] %v2646_v55 }
  0xc0   : > { %v2648_v56 = vpop.xlane.xlu1 %613  ;;  %v2650_v57 = vpop.xlane.xlu0 %610 }
  0xc1   : > { %3461 = vst [vmem:[#allocation5_spill] sm:$0xff] %v2648_v56  ;;  %3462 = vst [vmem:[#allocation6_spill] sm:$0xff] %v2650_v57 }
  0xc4   : > { %v2652_v58 = vpop.xlane.xlu1 %619  ;;  %v2657_v60 = vpop.xlane.xlu0 %616 }
  0xc5   : > { %3463 = vst [vmem:[#allocation7_spill] sm:$0xff] %v2652_v58  ;;  %3464 = vst [vmem:[#allocation8_spill] sm:$0xff] %v2657_v60 }
  0xc8   : > { %v777_v61 = vpop.permute.xlu1 %776  ;;  %v773_v62 = vpop.permute.xlu0 %772 }
  0xc9   : > { %vm835_vm3 = vcmp.eq.s32.totalorder %v2655_v59, %v777_v61  ;;  %vm834_vm4 = vcmp.eq.s32.totalorder %v2655_v59, %v773_v62 }
  0xca   : > { %v2241_v63 = vsel %vm835_vm3, 1.0, %v2439_v6  ;;  %v2240_v0 = vsel %vm834_vm4, 1.0, %v2439_v6 }
  0xcb   : > { %v883_v3 = vmul.f32 %v2241_v63, %v2554_v14  ;;  %v882_v7 = vmul.f32 %v2240_v0, %v2542_v9  ;;  %v623_v9 = vsub.f32 %v2536_v5, %v2624_v44  ;;  %v637_v14 = vmul.f32 1.442695, %v621_v41 }
  0xcc   : > { %v781_v4 = vpop.permute.xlu1 %780  ;;  %v789_v8 = vpop.permute.xlu0 %788 }
  0xcd   : > { %vm836_vm5 = vcmp.eq.s32.totalorder %v2655_v59, %v781_v4  ;;  %v901_v1 = vsel %vm572_vm0, %v883_v3, 0.0  ;;  %v898_v15 = vsel %vm572_vm0, %v882_v7, 0.0  ;;  %vm838_vm6 = vcmp.eq.s32.totalorder %v2655_v59, %v789_v8 }
  0xce   : > { %v2242_v11 = vsel %vm836_vm5, 1.0, %v2439_v6  ;;  %902 = vadd.xlane.f32.xlu1 %v901_v1  ;;  %899 = vadd.xlane.f32.xlu0 %v898_v15  ;;  %v2244_v21 = vsel %vm838_vm6, 1.0, %v2439_v6  ;;  %v624_v1 = vsub.f32 %v2545_v10, %v2628_v46  ;;  %2334 = vpow2.f32 %v637_v14 }
  0xcf   : > { %v884_v16 = vmul.f32 %v2242_v11, %v2536_v5  ;;  %v886_v32 = vmul.f32 %v2244_v21, %v2566_v19  ;;  %v639_v11 = vmul.f32 1.442695, %v622_v43  ;;  %v630_v14 = vsub.f32 %v2583_v26, %v2640_v52 }
  0xd0   : > { %v785_v17 = vpop.permute.xlu1 %784  ;;  %v797_v24 = vpop.permute.xlu0 %796  ;;  %vm1233_vm6 = vcmask 31744  }
  0xd1   : > { %vm837_vm7 = vcmp.eq.s32.totalorder %v2655_v59, %v785_v17  ;;  %v904_v20 = vsel %vm572_vm0, %v884_v16, 0.0  ;;  %vm840_vm8 = vcmp.eq.s32.totalorder %v2655_v59, %v797_v24  ;;  %v910_v62 = vsel %vm572_vm0, %v886_v32, 0.0 }
  0xd2   : > { %v2243_v25 = vsel %vm837_vm7, 1.0, %v2439_v6  ;;  %905 = vadd.xlane.f32.xlu0 %v904_v20  ;;  %v2246_v36 = vsel %vm840_vm8, 1.0, %v2439_v6  ;;  %v641_v24 = vmul.f32 1.442695, %v623_v9  ;;  %2336 = vpow2.f32 %v639_v11 }
  0xd3   : > { %v885_v28 = vmul.f32 %v2243_v25, %v2545_v10  ;;  %v888_v63 = vmul.f32 %v2246_v36, %v2576_v23  ;;  %v643_v10 = vmul.f32 1.442695, %v624_v1  ;;  %v629_v11 = vsub.f32 %v2586_v27, %v2642_v53 }
  0xd4   : > { %v793_v29 = vpop.permute.xlu1 %792  ;;  %v805_v37 = vpop.permute.xlu0 %804  ;;  %2338 = vpow2.f32 %v641_v24  ;;  %v631_v24 = vsub.f32 %v2596_v31, %v2646_v55 }
  0xd5   : > { %vm839_vm9 = vcmp.eq.s32.totalorder %v2655_v59, %v793_v29  ;;  %v907_v33 = vsel %vm572_vm0, %v885_v28, 0.0  ;;  %vm842_vm10 = vcmp.eq.s32.totalorder %v2655_v59, %v805_v37  ;;  %v916_v16 = vsel %vm572_vm0, %v888_v63, 0.0 }
  0xd6   : > { %v2245_v40 = vsel %vm839_vm9, 1.0, %v2439_v6  ;;  %908 = vadd.xlane.f32.xlu0 %v907_v33  ;;  %v2248_v3 = vsel %vm842_vm10, 1.0, %v2439_v6  ;;  %v626_v29 = vsub.f32 %v2563_v18, %v2632_v48  ;;  %v625_v37 = vsub.f32 %v2566_v19, %v2634_v49 }
  0xd7   : > { %v887_v42 = vmul.f32 %v2245_v40, %v2563_v18  ;;  %v890_v17 = vmul.f32 %v2248_v3, %v2586_v27  ;;  %2340 = vpow2.f32 %v643_v10  ;;  %v627_v3 = vsub.f32 %v2576_v23, %v2638_v51 }
  0xd8   : > { %v801_v61 = vpop.permute.xlu1 %800  ;;  %v813_v4 = vpop.permute.xlu0 %812  ;;  %v647_v43 = vmul.f32 1.442695, %v626_v29  ;;  %v633_v29 = vsub.f32 %v2606_v35, %v2650_v57 }
  0xd9   : > { %vm841_vm11 = vcmp.eq.s32.totalorder %v2655_v59, %v801_v61  ;;  %v913_v0 = vsel %vm572_vm0, %v887_v42, 0.0  ;;  %vm844_vm12 = vcmp.eq.s32.totalorder %v2655_v59, %v813_v4  ;;  %v922_v33 = vsel %vm572_vm0, %v890_v17, 0.0 }
  0xda   : > { %v2247_v7 = vsel %vm841_vm11, 1.0, %v2439_v6  ;;  %914 = vadd.xlane.f32.xlu1 %v913_v0  ;;  %911 = vadd.xlane.f32.xlu0 %v910_v62  ;;  %v2250_v20 = vsel %vm844_vm12, 1.0, %v2439_v6  ;;  %v628_v61 = vsub.f32 %v2573_v22, %v2636_v50  ;;  %v645_v0 = vmul.f32 1.442695, %v625_v37 }
  0xdb   : > { %v889_v8 = vmul.f32 %v2247_v7, %v2573_v22  ;;  %v892_v36 = vmul.f32 %v2250_v20, %v2596_v31  ;;  %2342 = vpow2.f32 %v647_v43  ;;  %v649_v23 = vmul.f32 1.442695, %v627_v3 }
  0xdc   : > { %v809_v15 = vpop.permute.xlu1 %808  ;;  %v821_v21 = vpop.permute.xlu0 %820  ;;  %v651_v22 = vmul.f32 1.442695, %v628_v61  ;;  %2344 = vpow2.f32 %v645_v0  ;;  %v632_v20 = vsub.f32 %v2593_v30, %v2644_v54  ;;  %v1090_v61 = vld [vmem:[%s2753_s26 + $0x8] sm:$0xff]  ;;  %v1105_v0 = vld [vmem:[%s2759_s12] sm:$0xff] }
  0xdd   : > { %vm843_vm13 = vcmp.eq.s32.totalorder %v2655_v59, %v809_v15  ;;  %v919_v5 = vsel %vm572_vm0, %v889_v8, 0.0  ;;  %vm846_vm14 = vcmp.eq.s32.totalorder %v2655_v59, %v821_v21  ;;  %v928_v19 = vsel %vm572_vm0, %v892_v36, 0.0  ;;  %v2335_v8 = vpop.eup %2334 }
  0xde   : > { %v2249_v25 = vsel %vm843_vm13, 1.0, %v2439_v6  ;;  %920 = vadd.xlane.f32.xlu1 %v919_v5  ;;  %917 = vadd.xlane.f32.xlu0 %v916_v16  ;;  %v2252_v41 = vsel %vm846_vm14, 1.0, %v2439_v6  ;;  %v2337_v16 = vpop.eup %2336  ;;  %2346 = vpow2.f32 %v651_v22  ;;  %v655_v5 = vmul.f32 1.442695, %v630_v14 }
  0xdf   : > { %v891_v28 = vmul.f32 %v2249_v25, %v2583_v26  ;;  %v894_v63 = vmul.f32 %v2252_v41, %v2606_v35  ;;  %v2339_v17 = vpop.eup %2338  ;;  %2348 = vpow2.f32 %v649_v23  ;;  %v653_v21 = vmul.f32 1.442695, %v629_v11  ;;  %v1092_v23 = vld [vmem:[%s2753_s26 + $0x18] sm:$0xff] }
  0xe0   : > { %v817_v32 = vpop.permute.xlu1 %816  ;;  %v672_v25 = vsel %vm572_vm0, %v2337_v16, 0.0  ;;  %v669_v27 = vsel %vm572_vm0, %v2335_v8, 0.0  ;;  %2350 = vpow2.f32 %v655_v5  ;;  %v659_v10 = vmul.f32 1.442695, %v632_v20  ;;  %v1108_v11 = vld [vmem:[%s2759_s12 + $0x18] sm:$0xff] }
  0xe1   : > { %vm845_vm15 = vcmp.eq.s32.totalorder %v2655_v59, %v817_v32  ;;  %v925_v40 = vsel %vm572_vm0, %v891_v28, 0.0  ;;  %v934_v1 = vsel %vm572_vm0, %v894_v63, 0.0  ;;  %v2341_v26 = vpop.eup %2340  ;;  %v634_v28 = vsub.f32 %v2603_v34, %v2648_v56  ;;  %v1089_v63 = vld [vmem:[%s2753_s26] sm:$0xff] }
  0xe2   : > { %v2251_v42 = vsel %vm845_vm15, 1.0, %v2439_v6  ;;  %926 = vadd.xlane.f32.xlu1 %v925_v40  ;;  %923 = vadd.xlane.f32.xlu0 %v922_v33  ;;  %2352 = vpow2.f32 %v653_v21  ;;  %v678_v31 = vsel %vm572_vm0, %v2341_v26, 0.0  ;;  %v675_v33 = vsel %vm572_vm0, %v2339_v17, 0.0  ;;  %v829_v21 = vpop.permute.xlu0 %828 }
  0xe3   : > { %v893_v18 = vmul.f32 %v2251_v42, %v2593_v30  ;;  %v657_v30 = vmul.f32 1.442695, %v631_v24  ;;  %2354 = vpow2.f32 %v659_v10  ;;  %v663_v37 = vmul.f32 1.442695, %v634_v28  ;;  %v1107_v10 = vld [vmem:[%s2759_s12 + $0x10] sm:$0xff] }
  0xe4   : > { %v825_v62 = vpop.permute.xlu1 %824  ;;  %v636_v40 = vsub.f32 %v2613_v38, %v2652_v58  ;;  %v635_v35 = vsub.f32 %v2616_v39, %v2657_v60  ;;  %v1124_v28 = vsub.f32 %v1092_v23, %v1108_v11  ;;  %vm848_vm3 = vcmp.eq.s32.totalorder %v2655_v59, %v829_v21  ;;  %v1095_v11 = vld [vmem:[%s2753_s26 + $0x30] sm:$0xff]  ;;  %v1538_v60 = vld [vmem:[%s2936_s16 + $0x58] sm:$0xff] }
  0xe5   : > { %vm847_vm1 = vcmp.eq.s32.totalorder %v2655_v59, %v825_v62  ;;  %v931_v4 = vsel %vm572_vm0, %v893_v18, 0.0  ;;  %v2343_v32 = vpop.eup %2342  ;;  %2356 = vpow2.f32 %v657_v30  ;;  %v1106_v62 = vld [vmem:[%s2759_s12 + $0x8] sm:$0xff]  ;;  %v3048_v58 = vadd.s32 4294967256, %v2655_v59 }
  0xe6   : > { %v2253_v9 = vsel %vm847_vm1, 1.0, %v2439_v6  ;;  %932 = vadd.xlane.f32.xlu1 %v931_v4  ;;  %929 = vadd.xlane.f32.xlu0 %v928_v19  ;;  %v2345_v36 = vpop.eup %2344  ;;  %v684_v41 = vsel %vm572_vm0, %v2343_v32, 0.0  ;;  %2358 = vpow2.f32 %v663_v37  ;;  %v667_v19 = vmul.f32 1.442695, %v636_v40  ;;  %v1094_v30 = vld [vmem:[%s2753_s26 + $0x28] sm:$0xff] }
  0xe7   : > { %v895_v7 = vmul.f32 %v2253_v9, %v2603_v34  ;;  %v661_v34 = vmul.f32 1.442695, %v633_v29  ;;  %v681_v18 = vsel %vm572_vm0, %v2345_v36, 0.0  ;;  %v665_v3 = vmul.f32 1.442695, %v635_v35  ;;  %v1110_v29 = vld [vmem:[%s2759_s12 + $0x28] sm:$0xff] }
  0xe8   : > { %v2347_v42 = vpop.eup %2346  ;;  %v1122_v22 = vsub.f32 %v1090_v61, %v1106_v62  ;;  %v833_v17 = vpop.permute.xlu1 %832 }
  0xe9   : > { %v937_v15 = vsel %vm572_vm0, %v895_v7, 0.0  ;;  %v2349_v43 = vpop.eup %2348  ;;  %2360 = vpow2.f32 %v661_v34  ;;  %v690_v4 = vsel %vm572_vm0, %v2347_v42, 0.0  ;;  %vm849_vm2 = vcmp.eq.s32.totalorder %v2655_v59, %v833_v17 }
  0xea   : > { %938 = vadd.xlane.f32.xlu1 %v937_v15  ;;  %935 = vadd.xlane.f32.xlu0 %v934_v1  ;;  %v2351_v9 = vpop.eup %2350  ;;  %v687_v7 = vsel %vm572_vm0, %v2349_v43, 0.0  ;;  %v1121_v1 = vsub.f32 %v1089_v63, %v1105_v0  ;;  %2362 = vpow2.f32 %v667_v19  ;;  %v1138_v5 = vand.u32 2147483647, %v1122_v22  ;;  %v1109_v43 = vld [vmem:[%s2759_s12 + $0x20] sm:$0xff] }
  0xeb   : > { %2364 = vpow2.f32 %v665_v3  ;;  %v696_v8 = vsel %vm572_vm0, %v2351_v9, 0.0  ;;  %v1170_v20 = vmul.f32 0.5, %v1122_v22  ;;  %v1126_v42 = vsub.f32 %v1094_v30, %v1110_v29  ;;  %v1096_v9 = vld [vmem:[%s2753_s26 + $0x38] sm:$0xff] }
  0xec   : > { %v2353_v14 = vpop.eup %2352  ;;  %v1137_v24 = vand.u32 2147483647, %v1121_v1  ;;  %v2257_v34 = vadd.f32 -0.5, %v1138_v5  ;;  %v2255_v61 = vsel %vm849_vm2, 1.0, %v2439_v6  ;;  %vm2788_vm4 = vcmp.lt.f32.partialorder %v1138_v5, 1.0 }
  0xed   : > { %v2355_v15 = vpop.eup %2354  ;;  %v693_v16 = vsel %vm572_vm0, %v2353_v14, 0.0  ;;  %v2783_v36 = vmul.f32 %v1170_v20, %v1122_v22  ;;  %v1140_v63 = vand.u32 2147483647, %v1124_v28  ;;  %v2254_v3 = vsel %vm848_vm3, 1.0, %v2439_v6 }
  0xee   : > { %673 = vadd.xlane.f32.xlu1 %v672_v25  ;;  %670 = vadd.xlane.f32.xlu0 %v669_v27  ;;  %v1169_v25 = vmul.f32 0.5, %v1121_v1  ;;  %v1091_v27 = vld [vmem:[%s2753_s26 + $0x10] sm:$0xff]  ;;  %vm2792_vm5 = vcmp.lt.f32.partialorder %v1137_v24, 1.0  ;;  %v897_v17 = vmul.f32 %v2255_v61, %v2613_v38  ;;  %v1142_v20 = vand.u32 2147483647, %v1126_v42 }
  0xef   : > { %v2357_v26 = vpop.eup %2356  ;;  %v1123_v37 = vsub.f32 %v1091_v27, %v1107_v10  ;;  %v1218_v6 = vsel %vm2788_vm4, %v2783_v36, %v2257_v34  ;;  %vm2812_vm7 = vcmp.lt.f32.partialorder %v1140_v63, 1.0  ;;  %v2259_v10 = vadd.f32 -0.5, %v1140_v63  ;;  %v1114_v36 = vld [vmem:[%s2759_s12 + $0x48] sm:$0xff] }
  0xf0   : > { %v2359_v32 = vpop.eup %2358  ;;  %v1185_v35 = vmul.f32 %v1169_v25, %v1121_v1  ;;  %vm2828_vm9 = vcmp.lt.f32.partialorder %v1142_v20, 1.0 }
  0xf1   : > { %v708_v0 = vsel %vm572_vm0, %v2359_v32, 0.0  ;;  %v1139_v1 = vand.u32 2147483647, %v1123_v37 }
  0xf2   : > { %679 = vadd.xlane.f32.xlu1 %v678_v31  ;;  %676 = vadd.xlane.f32.xlu0 %v675_v33  ;;  %v702_v31 = vsel %vm572_vm0, %v2355_v15, 0.0  ;;  %v699_v33 = vsel %vm572_vm0, %v2357_v26, 0.0  ;;  %v1111_v15 = vld [vmem:[%s2759_s12 + $0x30] sm:$0xff]  ;;  %v896_v26 = vmul.f32 %v2254_v3, %v2616_v39 }
  0xf3   : > { %v2361_v40 = vpop.eup %2360  ;;  %v1127_v30 = vsub.f32 %v1095_v11, %v1111_v15  ;;  %vm2818_vm8 = vcmp.lt.f32.partialorder %v1139_v1, 1.0  ;;  %v2258_v34 = vadd.f32 -0.5, %v1139_v1 }
  0xf4   : > { %v2363_v22 = vpop.eup %2362  ;;  %v705_v14 = vsel %vm572_vm0, %v2361_v40, 0.0  ;;  %v943_v40 = vsel %vm572_vm0, %v897_v17, 0.0  ;;  %v1100_v17 = vld [vmem:[%s2753_s26 + $0x58] sm:$0xff] }
  0xf5   : > { %v714_v38 = vsel %vm572_vm0, %v2363_v22, 0.0 }
  0xf6   : > { %685 = vadd.xlane.f32.xlu1 %v684_v41  ;;  %682 = vadd.xlane.f32.xlu0 %v681_v18  ;;  %v2256_v41 = vadd.f32 -0.5, %v1137_v24  ;;  %v1093_v18 = vld [vmem:[%s2753_s26 + $0x20] sm:$0xff]  ;;  %v1174_v24 = vmul.f32 0.5, %v1126_v42 }
  0xf7   : > { %v1125_v23 = vsub.f32 %v1093_v18, %v1109_v43  ;;  %v1113_v18 = vld [vmem:[%s2759_s12 + $0x40] sm:$0xff]  ;;  %v940_v43 = vsel %vm572_vm0, %v896_v26, 0.0 }
  0xf8   : > { %v1217_v5 = vsel %vm2792_vm5, %v1185_v35, %v2256_v41  ;;  %v2261_v35 = vadd.f32 -0.5, %v1142_v20  ;;  %v1097_v41 = vld [vmem:[%s2753_s26 + $0x40] sm:$0xff]  ;;  %v1190_v61 = vmul.f32 %v1174_v24, %v1126_v42  ;;  %v1099_v24 = vld [vmem:[%s2753_s26 + $0x50] sm:$0xff] }
  0xf9   : > { %v1141_v32 = vand.u32 2147483647, %v1125_v23 }
  0xfa   : > { %691 = vadd.xlane.f32.xlu1 %v690_v4  ;;  %688 = vadd.xlane.f32.xlu0 %v687_v7  ;;  %v1172_v4 = vmul.f32 0.5, %v1124_v28  ;;  %v1112_v7 = vld [vmem:[%s2759_s12 + $0x38] sm:$0xff] }
  0xfb   : > { %v1128_v25 = vsub.f32 %v1096_v9, %v1112_v7  ;;  %v1234_v9 = vsel %vm1233_vm6, %v1217_v5, 0.0  ;;  %v1129_v7 = vsub.f32 %v1097_v41, %v1113_v18  ;;  %v2260_v11 = vadd.f32 -0.5, %v1141_v32 }
  0xfc   : > { %v1188_v27 = vmul.f32 %v1172_v4, %v1124_v28  ;;  %v1173_v28 = vmul.f32 0.5, %v1125_v23  ;;  %v1237_v4 = vsel %vm1233_vm6, %v1218_v6, 0.0  ;;  %v1116_v6 = vld [vmem:[%s2759_s12 + $0x58] sm:$0xff] }
  0xfd   : > { %v1144_v62 = vand.u32 2147483647, %v1128_v25  ;;  %v1176_v19 = vmul.f32 0.5, %v1128_v25 }
  0xfe   : > { %697 = vadd.xlane.f32.xlu1 %v696_v8  ;;  %694 = vadd.xlane.f32.xlu0 %v693_v16  ;;  %v1171_v8 = vmul.f32 0.5, %v1123_v37  ;;  %v2365_v16 = vpop.eup %2364  ;;  %v1220_v42 = vsel %vm2812_vm7, %v1188_v27, %v2259_v10  ;;  %v1189_v1 = vmul.f32 %v1173_v28, %v1125_v23  ;;  %v1145_v10 = vand.u32 2147483647, %v1129_v7 }
  0xff   : > { %v711_v29 = vsel %vm572_vm0, %v2365_v16, 0.0  ;;  %vm2838_vm0 = vcmp.lt.f32.partialorder %v1141_v32, 1.0  ;;  %vm2844_vm10 = vcmp.lt.f32.partialorder %v1144_v62, 1.0  ;;  %v1192_v16 = vmul.f32 %v1176_v19, %v1128_v25  ;;  %v1117_v19 = vld [vmem:[%s2759_s12 + $0x60] sm:$0xff] }
 0x100   : > { %v1187_v39 = vmul.f32 %v1171_v8, %v1123_v37  ;;  %v1143_v37 = vand.u32 2147483647, %v1127_v30  ;;  %v1222_v8 = vsel %vm2828_vm9, %v1190_v61, %v2261_v35  ;;  %v2263_v5 = vadd.f32 -0.5, %v1144_v62  ;;  %v1101_v62 = vld [vmem:[%s2753_s26 + $0x60] sm:$0xff] }
 0x101   : > { %v1243_v25 = vsel %vm1233_vm6, %v1220_v42, 0.0  ;;  %v2264_v61 = vadd.f32 -0.5, %v1145_v10  ;;  %vm2873_vm13 = vcmp.lt.f32.partialorder %v1145_v10, 1.0 }
 0x102   : > { %703 = vadd.xlane.f32.xlu1 %v702_v31  ;;  %700 = vadd.xlane.f32.xlu0 %v699_v33  ;;  %v1098_v33 = vld [vmem:[%s2753_s26 + $0x48] sm:$0xff]  ;;  %v1219_v22 = vsel %vm2818_vm8, %v1187_v39, %v2258_v34  ;;  %v2262_v26 = vadd.f32 -0.5, %v1143_v37  ;;  %vm2852_vm11 = vcmp.lt.f32.partialorder %v1143_v37, 1.0  ;;  %v1132_v31 = vsub.f32 %v1100_v17, %v1116_v6  ;;  %v1119_v17 = vld [vmem:[%s2759_s12 + $0x70] sm:$0xff] }
 0x103   : > { %v1130_v3 = vsub.f32 %v1098_v33, %v1114_v36  ;;  %v1249_v39 = vsel %vm1233_vm6, %v1222_v8, 0.0  ;;  %v1102_v33 = vld [vmem:[%s2753_s26 + $0x68] sm:$0xff]  ;;  %v1224_v34 = vsel %vm2844_vm10, %v1192_v16, %v2263_v5  ;;  %v1103_v16 = vld [vmem:[%s2753_s26 + $0x70] sm:$0xff] }
 0x104   : > { %v1118_v36 = vld [vmem:[%s2759_s12 + $0x68] sm:$0xff]  ;;  %v1148_v37 = vand.u32 2147483647, %v1132_v31 }
 0x105   : > { %v1146_v21 = vand.u32 2147483647, %v1130_v3  ;;  %v1178_v27 = vmul.f32 0.5, %v1130_v3 }
 0x106   : > { %709 = vadd.xlane.f32.xlu1 %v708_v0  ;;  %706 = vadd.xlane.f32.xlu0 %v705_v14  ;;  %v1175_v0 = vmul.f32 0.5, %v1127_v30  ;;  %v1104_v14 = vld [vmem:[%s2753_s26 + $0x78] sm:$0xff]  ;;  %v2267_v5 = vadd.f32 -0.5, %v1148_v37  ;;  %vm2888_vm14 = vcmp.lt.f32.partialorder %v1148_v37, 1.0 }
 0x107   : > { %vm2867_vm12 = vcmp.lt.f32.partialorder %v1146_v21, 1.0  ;;  %v1194_v41 = vmul.f32 %v1178_v27, %v1130_v3  ;;  %v2265_v18 = vadd.f32 -0.5, %v1146_v21  ;;  %v1530_v27 = vld [vmem:[%s2936_s16 + $0x18] sm:$0xff] }
 0x108   : > { %v1191_v20 = vmul.f32 %v1175_v0, %v1127_v30  ;;  %v1240_v30 = vsel %vm1233_vm6, %v1219_v22, 0.0  ;;  %v1180_v0 = vmul.f32 0.5, %v1132_v31  ;;  %v1133_v22 = vsub.f32 %v1101_v62, %v1117_v19 }
 0x10a   : > { %715 = vadd.xlane.f32.xlu1 %v714_v38  ;;  %712 = vadd.xlane.f32.xlu0 %v711_v29  ;;  %v1115_v38 = vld [vmem:[%s2759_s12 + $0x50] sm:$0xff]  ;;  %v1177_v29 = vmul.f32 0.5, %v1129_v7  ;;  %v1223_v35 = vsel %vm2852_vm11, %v1191_v20, %v2262_v26  ;;  %v1196_v6 = vmul.f32 %v1180_v0, %v1132_v31  ;;  %v1149_v10 = vand.u32 2147483647, %v1133_v22 }
 0x10b   : > { %v1131_v32 = vsub.f32 %v1099_v24, %v1115_v38  ;;  %v1252_v8 = vsel %vm1233_vm6, %v1223_v35, 0.0 }
 0x10c   : > { %vm2906_vm2 = vcmp.lt.f32.partialorder %v1149_v10, 1.0 }
 0x10d   : > { %v1147_v42 = vand.u32 2147483647, %v1131_v32  ;;  %v1179_v3 = vmul.f32 0.5, %v1131_v32 }
 0x10e   : > { %944 = vadd.xlane.f32.xlu1 %v943_v40  ;;  %941 = vadd.xlane.f32.xlu0 %v940_v43  ;;  %v1221_v40 = vsel %vm2838_vm0, %v1189_v1, %v2260_v11  ;;  %v1193_v43 = vmul.f32 %v1177_v29, %v1129_v7  ;;  %v1120_v7 = vld [vmem:[%s2759_s12 + $0x78] sm:$0xff]  ;;  %v1255_v1 = vsel %vm1233_vm6, %v1224_v34, 0.0  ;;  %v1226_v11 = vsel %vm2867_vm12, %v1194_v41, %v2265_v18 }
 0x10f   : > { %v1195_v24 = vmul.f32 %v1179_v3, %v1131_v32  ;;  %v2266_v38 = vadd.f32 -0.5, %v1147_v42  ;;  %v1136_v23 = vsub.f32 %v1104_v14, %v1120_v7  ;;  %vm2892_vm15 = vcmp.lt.f32.partialorder %v1147_v42, 1.0 }
 0x110   : > { %v1225_v15 = vsel %vm2873_vm13, %v1193_v43, %v2264_v61  ;;  %v1181_v29 = vmul.f32 0.5, %v1133_v22  ;;  %v1261_v31 = vsel %vm1233_vm6, %v1226_v11, 0.0  ;;  %v2268_v41 = vadd.f32 -0.5, %v1149_v10  ;;  %v1527_v11 = vld [vmem:[%s2936_s16] sm:$0xff]  ;;  %v1546_v10 = vld [vmem:[%s2942_s19 + $0x18] sm:$0xff]  ;;  %v1548_v61 = vld [vmem:[%s2942_s19 + $0x28] sm:$0xff] }
 0x111   : > { %v1152_v34 = vand.u32 2147483647, %v1136_v23  ;;  %v1184_v35 = vmul.f32 0.5, %v1136_v23 }
 0x112   : > { %1238 = vadd.xlane.f32.xlu1 %v1237_v4  ;;  %1235 = vadd.xlane.f32.xlu0 %v1234_v9  ;;  %v1134_v4 = vsub.f32 %v1102_v33, %v1118_v36  ;;  %v1246_v9 = vsel %vm1233_vm6, %v1221_v40, 0.0  ;;  %v1227_v36 = vsel %vm2892_vm15, %v1195_v24, %v2266_v38  ;;  %v1197_v28 = vmul.f32 %v1181_v29, %v1133_v22  ;;  %v1528_v29 = vld [vmem:[%s2936_s16 + $0x8] sm:$0xff] }
 0x113   : > { %v1264_v19 = vsel %vm1233_vm6, %v1227_v36, 0.0  ;;  %v1200_v37 = vmul.f32 %v1184_v35, %v1136_v23  ;;  %v2271_v0 = vadd.f32 -0.5, %v1152_v34  ;;  %vm1168_vm3 = vcmp.lt.f32.partialorder %v1152_v34, 1.0 }
 0x114   : > { %v1150_v20 = vand.u32 2147483647, %v1134_v4  ;;  %v1182_v26 = vmul.f32 0.5, %v1134_v4  ;;  %v1562_v34 = vsub.f32 %v1530_v27, %v1546_v10  ;;  %v996_v10 = vadd.s32 4294967272, %v2655_v59 }
 0x115   : > { %v1232_v14 = vsel %vm1168_vm3, %v1200_v37, %v2271_v0  ;;  %vm987_vm3 = vcmask 130112  }
 0x116   : > { %1244 = vadd.xlane.f32.xlu1 %v1243_v25  ;;  %1241 = vadd.xlane.f32.xlu0 %v1240_v30  ;;  %v1135_v25 = vsub.f32 %v1103_v16, %v1119_v17  ;;  %v1258_v30 = vsel %vm1233_vm6, %v1225_v15, 0.0  ;;  %vm2900_vm1 = vcmp.lt.f32.partialorder %v1150_v20, 1.0  ;;  %v1198_v33 = vmul.f32 %v1182_v26, %v1134_v4  ;;  %v1543_v15 = vld [vmem:[%s2942_s19] sm:$0xff] }
 0x117   : > { %v2269_v40 = vadd.f32 -0.5, %v1150_v20  ;;  %v1229_v4 = vsel %vm2906_vm2, %v1197_v28, %v2268_v41  ;;  %v1559_v17 = vsub.f32 %v1527_v11, %v1543_v15  ;;  %v1545_v20 = vld [vmem:[%s2942_s19 + $0x10] sm:$0xff]  ;;  %v1578_v0 = vand.u32 2147483647, %v1562_v34 }
 0x118   : > { %v1151_v18 = vand.u32 2147483647, %v1135_v25  ;;  %v1183_v43 = vmul.f32 0.5, %v1135_v25  ;;  %v1270_v22 = vsel %vm1233_vm6, %v1229_v4, 0.0  ;;  %v1610_v4 = vmul.f32 0.5, %v1562_v34 }
 0x119   : > { %v1230_v63 = vsel %vm2900_vm1, %v1198_v33, %v2269_v40  ;;  %v1575_v26 = vand.u32 2147483647, %v1559_v17  ;;  %v1607_v21 = vmul.f32 0.5, %v1559_v17  ;;  %v2275_v27 = vadd.f32 -0.5, %v1578_v0  ;;  %v1550_v33 = vld [vmem:[%s2942_s19 + $0x38] sm:$0xff] }
 0x11a   : > { %1250 = vadd.xlane.f32.xlu1 %v1249_v39  ;;  %1247 = vadd.xlane.f32.xlu0 %v1246_v9  ;;  %v1228_v39 = vsel %vm2888_vm14, %v1196_v6, %v2267_v5  ;;  %v1199_v9 = vmul.f32 %v1183_v43, %v1135_v25  ;;  %v2270_v42 = vadd.f32 -0.5, %v1151_v18  ;;  %vm1167_vm4 = vcmp.lt.f32.partialorder %v1151_v18, 1.0  ;;  %v1529_v5 = vld [vmem:[%s2936_s16 + $0x10] sm:$0xff]  ;;  %v1544_v25 = vld [vmem:[%s2942_s19 + $0x8] sm:$0xff] }
 0x11b   : > { %v1267_v62 = vsel %vm1233_vm6, %v1228_v39, 0.0  ;;  %v1273_v3 = vsel %vm1233_vm6, %v1230_v63, 0.0  ;;  %v1561_v38 = vsub.f32 %v1529_v5, %v1545_v20  ;;  %v1547_v39 = vld [vmem:[%s2942_s19 + $0x20] sm:$0xff]  ;;  %vm2968_vm5 = vcmp.lt.f32.partialorder %v1575_v26, 1.0  ;;  %v1532_v43 = vld [vmem:[%s2936_s16 + $0x28] sm:$0xff] }
 0x11c   : > { %v1231_v7 = vsel %vm1167_vm4, %v1199_v9, %v2270_v42  ;;  %v1560_v28 = vsub.f32 %v1528_v29, %v1544_v25  ;;  %v1533_v9 = vld [vmem:[%s2936_s16 + $0x30] sm:$0xff]  ;;  %v1564_v11 = vsub.f32 %v1532_v43, %v1548_v61  ;;  %v989_v20 = vadd.s32 4294967280, %v2655_v59 }
 0x11d   : > { %v1577_v36 = vand.u32 2147483647, %v1561_v38  ;;  %v1609_v40 = vmul.f32 0.5, %v1561_v38  ;;  %v1549_v42 = vld [vmem:[%s2942_s19 + $0x30] sm:$0xff]  ;;  %vm3003_vm8 = vcmp.lt.f32.partialorder %v1578_v0, 1.0  ;;  %vm994_vm4 = vcmask 195712  }
 0x11e   : > { %1256 = vadd.xlane.f32.xlu1 %v1255_v1  ;;  %1253 = vadd.xlane.f32.xlu0 %v1252_v8  ;;  %v1279_v1 = vsel %vm1233_vm6, %v1232_v14, 0.0  ;;  %v1276_v8 = vsel %vm1233_vm6, %v1231_v7, 0.0  ;;  %vm1671_vm6 = vcmask 80896   ;;  %v1576_v14 = vand.u32 2147483647, %v1560_v28 }
 0x11f   : > { %v1625_v63 = vmul.f32 %v1609_v40, %v1561_v38  ;;  %v2274_v37 = vadd.f32 -0.5, %v1577_v36  ;;  %vm2985_vm7 = vcmp.lt.f32.partialorder %v1577_v36, 1.0  ;;  %v1608_v7 = vmul.f32 0.5, %v1560_v28 }
 0x120   : > { %v1626_v38 = vmul.f32 %v1610_v4, %v1562_v34  ;;  %vm3007_vm9 = vcmp.lt.f32.partialorder %v1576_v14, 1.0  ;;  %v1580_v34 = vand.u32 2147483647, %v1564_v11 }
 0x122   : > { %1262 = vadd.xlane.f32.xlu1 %v1261_v31  ;;  %1259 = vadd.xlane.f32.xlu0 %v1258_v30  ;;  %v1623_v31 = vmul.f32 %v1607_v21, %v1559_v17  ;;  %v1531_v30 = vld [vmem:[%s2936_s16 + $0x20] sm:$0xff]  ;;  %v1565_v17 = vsub.f32 %v1533_v9, %v1549_v42  ;;  %v1657_v21 = vsel %vm2985_vm7, %v1625_v63, %v2274_v37  ;;  %v1536_v9 = vld [vmem:[%s2936_s16 + $0x48] sm:$0xff]  ;;  %v3054_v57 = vadd.f32 -0.5, %v1580_v34 }
 0x123   : > { %v1563_v41 = vsub.f32 %v1531_v30, %v1547_v39  ;;  %v2273_v30 = vadd.f32 -0.5, %v1576_v14  ;;  %v1534_v39 = vld [vmem:[%s2936_s16 + $0x38] sm:$0xff]  ;;  %v1535_v63 = vld [vmem:[%s2936_s16 + $0x40] sm:$0xff]  ;;  %v3021_v37 = vsub.s32 %v2655_v59, %v2518_v2  ;;  %v1552_v42 = vld [vmem:[%s2942_s19 + $0x48] sm:$0xff]  ;;  %v3032_v14 = vsub.s32 %v989_v20, %v2518_v2 }
 0x124   : > { %v1581_v61 = vand.u32 2147483647, %v1565_v17  ;;  %v1566_v4 = vsub.f32 %v1534_v39, %v1550_v33  ;;  %v1554_v39 = vld [vmem:[%s2942_s19 + $0x58] sm:$0xff]  ;;  %v1003_v33 = vadd.s32 4294967264, %v2655_v59  ;;  %vm3056_vm10 = vcmp.lt.f32.partialorder %v1580_v34, 1.0 }
 0x125   : > { %vm1001_vm7 = vcmask 261312  }
 0x126   : > { %1268 = vadd.xlane.f32.xlu1 %v1267_v62  ;;  %1265 = vadd.xlane.f32.xlu0 %v1264_v19  ;;  %v982_v62 = vadd.s32 4294967288, %v2655_v59  ;;  %vm3064_vm11 = vcmp.lt.f32.partialorder %v1581_v61, 1.0 }
 0x128   : > { %v2993_v5 = vsub.s32 %v982_v62, %v2518_v2  ;;  %v1613_v62 = vmul.f32 0.5, %v1565_v17 }
 0x12a   : > { %1274 = vadd.xlane.f32.xlu1 %v1273_v3  ;;  %1271 = vadd.xlane.f32.xlu0 %v1270_v22  ;;  %v1537_v22 = vld [vmem:[%s2936_s16 + $0x50] sm:$0xff] }
 0x12e   : > { %1280 = vadd.xlane.f32.xlu1 %v1279_v1  ;;  %1277 = vadd.xlane.f32.xlu0 %v1276_v8  ;;  %v1579_v1 = vand.u32 2147483647, %v1563_v41  ;;  %v1611_v8 = vmul.f32 0.5, %v1563_v41 }
 0x130   : > { %v1627_v36 = vmul.f32 %v1611_v8, %v1563_v41  ;;  %v2276_v40 = vadd.f32 -0.5, %v1579_v1  ;;  %vm3013_vm0 = vcmp.lt.f32.partialorder %v1579_v1, 1.0  ;;  %v3026_v41 = vsel %vm1671_vm6, %v1657_v21, 0.0  ;;  %v1553_v21 = vld [vmem:[%s2942_s19 + $0x50] sm:$0xff] }
 0x131   : > { %v1658_v8 = vsel %vm3003_vm8, %v1626_v38, %v2275_v27  ;;  %v3060_v27 = vmul.f32 %v1613_v62, %v1565_v17  ;;  %v1614_v62 = vmul.f32 0.5, %v1566_v4 }
 0x132   : > { %v1659_v20 = vsel %vm3013_vm0, %v1627_v36, %v2276_v40  ;;  %v1569_v36 = vsub.f32 %v1537_v22, %v1553_v21  ;;  %v1570_v40 = vsub.f32 %v1538_v60, %v1554_v39  ;;  %v3071_v34 = vsel %vm1671_vm6, %v1658_v8, 0.0 }
 0x133   : > { %v3081_v22 = vsub.s32 %v1003_v33, %v2518_v2 }
 0x134   : > { %v1617_v56 = vmul.f32 0.5, %v1569_v36  ;;  %v1618_v33 = vmul.f32 0.5, %v1570_v40 }
 0x13f   : > { %1292 = vbcast.lane.b32.xlu1 %v2549_v12, 264 }
 0x143   : > { %1296 = vbcast.lane.b32.xlu1 %v2549_v12, 272 }
 0x144   : > { %1288 = vbcast.lane.b32.xlu0 %v2549_v12, 256 }
 0x147   : > { %1300 = vbcast.lane.b32.xlu1 %v2549_v12, 280 }
 0x148   : > { %1304 = vbcast.lane.b32.xlu0 %v2549_v12, 288 }
 0x14b   : > { %1308 = vbcast.lane.b32.xlu1 %v2549_v12, 296 }
 0x14c   : > { %1312 = vbcast.lane.b32.xlu0 %v2549_v12, 304 }
 0x14f   : > { %1316 = vbcast.lane.b32.xlu1 %v2549_v12, 312 }
 0x150   : > { %1320 = vbcast.lane.b32.xlu0 %v2549_v12, 320 }
 0x153   : > { %1324 = vbcast.lane.b32.xlu1 %v2549_v12, 328 }
 0x154   : > { %1328 = vbcast.lane.b32.xlu0 %v2549_v12, 336 }
 0x157   : > { %1332 = vbcast.lane.b32.xlu1 %v2549_v12, 344 }
 0x158   : > { %1336 = vbcast.lane.b32.xlu0 %v2549_v12, 352 }
 0x15b   : > { %1340 = vbcast.lane.b32.xlu1 %v2549_v12, 360  ;;  %v2948_v16 = vpop.xlane.xlu0 %899  ;;  %v2956_v24 = vpop.xlane.xlu1 %902 }
 0x15c   : > { %1344 = vbcast.lane.b32.xlu0 %v2549_v12, 368 }
 0x15f   : > { %1348 = vbcast.lane.b32.xlu1 %v2549_v12, 376  ;;  %v2952_v6 = vpop.xlane.xlu0 %905  ;;  %v2272_v12 = vadd.f32 -0.5, %v1575_v26 }
 0x161   : > { %v1655_v18 = vsel %vm2968_vm5, %v1623_v31, %v2272_v12  ;;  %v1624_v12 = vmul.f32 %v1608_v7, %v1560_v28  ;;  %v1551_v28 = vld [vmem:[%s2942_s19 + $0x40] sm:$0xff]  ;;  %v3035_v7 = vsub.s32 %v996_v10, %v2518_v2  ;;  %v2278_v31 = vadd.f32 -0.5, %v1581_v61 }
 0x162   : > { %v2990_v15 = vsel %vm1671_vm6, %v1655_v18, 0.0  ;;  %v1612_v18 = vmul.f32 0.5, %v1564_v11  ;;  %v1567_v25 = vsub.f32 %v1535_v63, %v1551_v28  ;;  %v1017_v63 = vadd.s32 4294967248, %v2655_v59 }
 0x163   : > { %v2958_v23 = vpop.xlane.xlu0 %908  ;;  %v1656_v13 = vsel %vm3007_vm9, %v1624_v12, %v2273_v30  ;;  %v1568_v12 = vsub.f32 %v1536_v9, %v1552_v42  ;;  %v3076_v28 = vsel %vm1671_vm6, %v1659_v20, 0.0  ;;  %v1539_v42 = vld [vmem:[%s2936_s16 + $0x60] sm:$0xff]  ;;  %v1558_v20 = vld [vmem:[%s2942_s19 + $0x78] sm:$0xff]  ;;  %vm1008_vm9 = vcmask 326912  }
 0x164   : > { %v3052_v10 = vmul.f32 %v1612_v18, %v1564_v11  ;;  %v1582_v11 = vand.u32 2147483647, %v1566_v4  ;;  %v1675_v17 = vsel %vm1671_vm6, %v1656_v13, 0.0  ;;  %v1583_v61 = vand.u32 2147483647, %v1567_v25 }
 0x165   : > { %v1615_v9 = vmul.f32 0.5, %v1567_v25  ;;  %v1661_v13 = vsel %vm3064_vm11, %v3060_v27, %v2278_v31  ;;  %v1584_v8 = vand.u32 2147483647, %v1568_v12  ;;  %v1616_v21 = vmul.f32 0.5, %v1568_v12 }
 0x166   : > { %v1660_v60 = vsel %vm3056_vm10, %v3052_v10, %v3054_v57  ;;  %vm3090_vm12 = vcmp.lt.f32.partialorder %v1582_v11, 1.0  ;;  %v1630_v57 = vmul.f32 %v1614_v62, %v1566_v4  ;;  %v1586_v10 = vand.u32 2147483647, %v1570_v40  ;;  %v1556_v4 = vld [vmem:[%s2942_s19 + $0x68] sm:$0xff] }
 0x167   : > { %v2966_v32 = vpop.xlane.xlu1 %914  ;;  %v2972_v35 = vpop.xlane.xlu0 %911  ;;  %v2279_v27 = vadd.f32 -0.5, %v1582_v11  ;;  %vm3095_vm13 = vcmp.lt.f32.partialorder %v1583_v61, 1.0  ;;  %v1631_v43 = vmul.f32 %v1615_v9, %v1567_v25  ;;  %vm3099_vm14 = vcmp.lt.f32.partialorder %v1584_v8, 1.0 }
 0x168   : > { %v2281_v54 = vadd.f32 -0.5, %v1584_v8  ;;  %v1557_v8 = vld [vmem:[%s2942_s19 + $0x70] sm:$0xff]  ;;  %vm3112_vm1 = vcmp.lt.f32.partialorder %v1586_v10, 1.0  ;;  %vm1015_vm10 = vcmask 392512   ;;  %vm1022_vm11 = vcmask 458112  }
 0x16b   : > { %v2979_v19 = vpop.xlane.xlu1 %920  ;;  %v2983_v3 = vpop.xlane.xlu0 %917 }
 0x16f   : > { %v2996_v26 = vpop.xlane.xlu1 %926  ;;  %v3001_v29 = vpop.xlane.xlu0 %923 }
 0x170   : > { %3497 = vst [vmem:[#allocation9_spill] sm:$0xff] %v2996_v26  ;;  %3498 = vst [vmem:[#allocation10_spill] sm:$0xff] %v3001_v29 }
 0x173   : > { %v3023_v0 = vpop.xlane.xlu1 %932  ;;  %v3037_v1 = vpop.xlane.xlu0 %929 }
 0x174   : > { %3505 = vst [vmem:[#allocation11_spill] sm:$0xff] %v3023_v0  ;;  %3506 = vst [vmem:[#allocation12_spill] sm:$0xff] %v3037_v1  ;;  %v2280_v0 = vadd.f32 -0.5, %v1583_v61  ;;  %v2283_v61 = vadd.f32 -0.5, %v1586_v10 }
 0x176   : > { %v1663_v10 = vsel %vm3095_vm13, %v1631_v43, %v2280_v0  ;;  %vm1043_vm13 = vcmask 654912  }
 0x177   : > { %v3062_v30 = vpop.xlane.xlu1 %938  ;;  %v3068_v18 = vpop.xlane.xlu0 %935 }
 0x178   : > { %3509 = vst [vmem:[#allocation13_spill] sm:$0xff] %v3062_v30  ;;  %3512 = vst [vmem:[#allocation14_spill] sm:$0xff] %v3068_v18  ;;  %v1555_v30 = vld [vmem:[%s2942_s19 + $0x60] sm:$0xff]  ;;  %v1585_v18 = vand.u32 2147483647, %v1569_v36 }
 0x179   : > { %v1571_v38 = vsub.f32 %v1539_v42, %v1555_v30  ;;  %v1633_v30 = vmul.f32 %v1617_v56, %v1569_v36  ;;  %v1634_v42 = vmul.f32 %v1618_v33, %v1570_v40  ;;  %v3117_v56 = vsub.s32 %v1017_v63, %v2518_v2 }
 0x17a   : > { %vm3105_vm15 = vcmp.lt.f32.partialorder %v1585_v18, 1.0  ;;  %v2282_v11 = vadd.f32 -0.5, %v1585_v18  ;;  %v1687_v36 = vsel %vm1671_vm6, %v1660_v60, 0.0  ;;  %v1662_v40 = vsel %vm3090_vm12, %v1630_v57, %v2279_v27 }
 0x17b   : > { %v674_v39 = vpop.xlane.xlu1 %673  ;;  %v671_v1 = vpop.xlane.xlu0 %670  ;;  %1673 = vadd.xlane.f32.xlu0 %v2990_v15  ;;  %v1540_v15 = vld [vmem:[%s2936_s16 + $0x68] sm:$0xff]  ;;  %v1587_v9 = vand.u32 2147483647, %v1571_v38  ;;  %v1619_v29 = vmul.f32 0.5, %v1571_v38  ;;  %v3125_v18 = vsub.s32 %v3048_v58, %v2518_v2  ;;  %v1666_v58 = vsel %vm3112_vm1, %v1634_v42, %v2283_v61 }
 0x17c   : > { %2366 = vlog2.f32 %v674_v39  ;;  %v1632_v39 = vmul.f32 %v1616_v21, %v1568_v12  ;;  %v1541_v12 = vld [vmem:[%s2936_s16 + $0x70] sm:$0xff]  ;;  %v1572_v26 = vsub.f32 %v1540_v15, %v1556_v4  ;;  %v1665_v60 = vsel %vm3105_vm15, %v1633_v30, %v2282_v11 }
 0x17d   : > { %2368 = vlog2.f32 %v671_v1  ;;  %v3133_v15 = vsub.f32 %v1541_v12, %v1557_v8  ;;  %v2284_v27 = vadd.f32 -0.5, %v1587_v9  ;;  %vm3140_vm2 = vcmp.lt.f32.partialorder %v1587_v9, 1.0 }
 0x17e   : > { %v1664_v63 = vsel %vm3099_vm14, %v1632_v39, %v2281_v54  ;;  %v1588_v54 = vand.u32 2147483647, %v1572_v26  ;;  %v1620_v0 = vmul.f32 0.5, %v1572_v26  ;;  %v1693_v43 = vsel %vm1671_vm6, %v1662_v40, 0.0 }
 0x17f   : > { %v680_v62 = vpop.xlane.xlu1 %679  ;;  %v677_v25 = vpop.xlane.xlu0 %676  ;;  %1679 = vadd.xlane.f32.xlu0 %v3026_v41  ;;  %v1690_v41 = vsel %vm1671_vm6, %v1661_v13, 0.0  ;;  %v1542_v13 = vld [vmem:[%s2936_s16 + $0x78] sm:$0xff]  ;;  %v1696_v39 = vsel %vm1671_vm6, %v1663_v10, 0.0  ;;  %v3152_v11 = vsel %vm1671_vm6, %v1666_v58, 0.0  ;;  %v1589_v9 = vand.u32 2147483647, %v3133_v15 }
 0x180   : > { %2370 = vlog2.f32 %v680_v62  ;;  %v1574_v4 = vsub.f32 %v1542_v13, %v1558_v20  ;;  %v1636_v8 = vmul.f32 %v1620_v0, %v1572_v26  ;;  %v2285_v21 = vadd.f32 -0.5, %v1588_v54 }
 0x181   : > { %2372 = vlog2.f32 %v677_v25  ;;  %vm3160_vm5 = vcmp.lt.f32.partialorder %v1588_v54, 1.0  ;;  %vm3176_vm8 = vcmp.lt.f32.partialorder %v1589_v9, 1.0  ;;  %vm1036_vm12 = vcmask 589312  }
 0x182   : > { %v1622_v10 = vmul.f32 0.5, %v1574_v4  ;;  %vm1050_vm14 = vcmask 720512   ;;  %vm1057_vm15 = vcmask 786112   ;;  %vm1064_vm1 = vcmask 851712  }
 0x183   : > { %v686_v33 = vpop.xlane.xlu1 %685  ;;  %1676 = vadd.xlane.f32.xlu1 %v1675_v17  ;;  %v683_v57 = vpop.xlane.xlu0 %682  ;;  %1682 = vadd.xlane.f32.xlu0 %v3071_v34  ;;  %v1635_v17 = vmul.f32 %v1619_v29, %v1571_v38  ;;  %v1031_v34 = vadd.s32 4294967232, %v2655_v59  ;;  %v1699_v29 = vsel %vm1671_vm6, %v1664_v63, 0.0  ;;  %v3149_v38 = vsel %vm1671_vm6, %v1665_v60, 0.0 }
 0x184   : > { %2374 = vlog2.f32 %v686_v33  ;;  %v1638_v0 = vmul.f32 %v1622_v10, %v1574_v4 }
 0x185   : > { %2376 = vlog2.f32 %v683_v57  ;;  %v1667_v61 = vsel %vm3140_vm2, %v1635_v17, %v2284_v27  ;;  %v3167_v26 = vsub.s32 %v1031_v34, %v2518_v2  ;;  %v1668_v27 = vsel %vm3160_vm5, %v1636_v8, %v2285_v21 }
 0x186   : > { %v2367_v31 = vpop.eup %2366  ;;  %v3171_v17 = vsel %vm1671_vm6, %v1667_v61, 0.0  ;;  %v1711_v21 = vsel %vm1671_vm6, %v1668_v27, 0.0  ;;  %vm1071_vm2 = vcmask 917312   ;;  %vm1078_vm5 = vcmask 982912  }
 0x187   : > { %v2369_v62 = vpop.eup %2368  ;;  %v720_v1 = vmul.f32 0.6931472, %v2367_v31  ;;  %v692_v30 = vpop.xlane.xlu1 %691  ;;  %1688 = vadd.xlane.f32.xlu1 %v1687_v36  ;;  %1685 = vadd.xlane.f32.xlu0 %v3076_v28  ;;  %v1590_v28 = vand.u32 2147483647, %v1574_v4 }
 0x188   : > { %v718_v42 = vmul.f32 0.6931472, %v2369_v62  ;;  %2378 = vlog2.f32 %v692_v30  ;;  %v689_v25 = vpop.xlane.xlu0 %688 }
 0x189   : > { %v750_v12 = vadd.f32 %v720_v1, %v2630_v47  ;;  %2380 = vlog2.f32 %v689_v25  ;;  %v1621_v47 = vmul.f32 0.5, %v3133_v15  ;;  %vm3181_vm0 = vcmp.lt.f32.partialorder %v1590_v28, 1.0 }
 0x18a   : > { %v2371_v36 = vpop.eup %2370  ;;  %v749_v40 = vadd.f32 %v718_v42, %v2626_v45  ;;  %v2287_v31 = vadd.f32 -0.5, %v1590_v28 }
 0x18b   : > { %v2373_v63 = vpop.eup %2372  ;;  %v947_v60 = vsub.f32 %v750_v12, %v2956_v24  ;;  %v724_v13 = vmul.f32 0.6931472, %v2371_v36  ;;  %v698_v20 = vpop.xlane.xlu1 %697  ;;  %1694 = vadd.xlane.f32.xlu1 %v1693_v43  ;;  %1691 = vadd.xlane.f32.xlu0 %v1690_v41  ;;  %v1637_v61 = vmul.f32 %v1621_v47, %v3133_v15 }
 0x18c   : > { %v946_v57 = vsub.f32 %v749_v40, %v2948_v16  ;;  %v722_v45 = vmul.f32 0.6931472, %v2373_v63  ;;  %2382 = vlog2.f32 %v698_v20  ;;  %v695_v58 = vpop.xlane.xlu0 %694 }
 0x18d   : > { %v752_v24 = vadd.f32 %v724_v13, %v2628_v46  ;;  %2384 = vlog2.f32 %v695_v58  ;;  %v986_v1 = vrot.slane %v947_v60, %v2993_v5 }
 0x18e   : > { %v2375_v16 = vpop.eup %2374  ;;  %v751_v54 = vadd.f32 %v722_v45, %v2624_v44  ;;  %v981_v30 = vrot.slane %v946_v57, %v3021_v37 }
 0x18f   : > { %v2377_v43 = vpop.eup %2376  ;;  %v949_v46 = vsub.f32 %v752_v24, %v2958_v23  ;;  %v728_v34 = vmul.f32 0.6931472, %v2375_v16  ;;  %v704_v62 = vpop.xlane.xlu1 %703  ;;  %1700 = vadd.xlane.f32.xlu1 %v1699_v29  ;;  %1697 = vadd.xlane.f32.xlu0 %v1696_v39  ;;  %v2286_v23 = vadd.f32 -0.5, %v1589_v9  ;;  %v1024_v29 = vadd.s32 4294967240, %v2655_v59 }
 0x190   : > { %v948_v42 = vsub.f32 %v751_v54, %v2952_v6  ;;  %v726_v25 = vmul.f32 0.6931472, %v2377_v43  ;;  %2386 = vlog2.f32 %v704_v62  ;;  %v701_v44 = vpop.xlane.xlu0 %700  ;;  %v1670_v6 = vsel %vm3181_vm0, %v1638_v0, %v2287_v31  ;;  %v3531_v62 = vld [vmem:[#allocation9_spill] sm:$0xff] }
 0x191   : > { %v754_v4 = vadd.f32 %v728_v34, %v2632_v48  ;;  %2388 = vlog2.f32 %v701_v44  ;;  %v988_v9 = vsel %vm987_vm3, %v986_v1, %v981_v30  ;;  %v1000_v33 = vrot.slane %v949_v46, %v3035_v7  ;;  %v3532_v44 = vld [vmem:[#allocation10_spill] sm:$0xff] }
 0x192   : > { %v2379_v12 = vpop.eup %2378  ;;  %v753_v8 = vadd.f32 %v726_v25, %v2634_v49  ;;  %v993_v39 = vrot.slane %v948_v42, %v3032_v14  ;;  %v1045_v0 = vadd.s32 4294967216, %v2655_v59  ;;  %v1052_v34 = vadd.s32 4294967208, %v2655_v59 }
 0x193   : > { %v2381_v36 = vpop.eup %2380  ;;  %v951_v15 = vsub.f32 %v754_v4, %v2966_v32  ;;  %v732_v40 = vmul.f32 0.6931472, %v2379_v12  ;;  %v710_v48 = vpop.xlane.xlu1 %709  ;;  %1706 = vadd.xlane.f32.xlu1 %v3152_v11  ;;  %1703 = vadd.xlane.f32.xlu0 %v3149_v38  ;;  %v1669_v32 = vsel %vm3176_vm8, %v1637_v61, %v2286_v23  ;;  %v3208_v11 = vsub.s32 %v1024_v29, %v2518_v2  ;;  %v3533_v29 = vld [vmem:[#allocation3_spill] sm:$0xff] }
 0x194   : > { %v950_v49 = vsub.f32 %v753_v8, %v2972_v35  ;;  %v730_v28 = vmul.f32 0.6931472, %v2381_v36  ;;  %2390 = vlog2.f32 %v710_v48  ;;  %v707_v10 = vpop.xlane.xlu0 %706  ;;  %v995_v63 = vsel %vm994_vm4, %v993_v39, %v988_v9  ;;  %v3534_v39 = vld [vmem:[#allocation4_spill] sm:$0xff] }
 0x195   : > { %v756_v60 = vadd.f32 %v732_v40, %v2636_v50  ;;  %2392 = vlog2.f32 %v707_v10  ;;  %v1717_v35 = vsel %vm1671_vm6, %v1670_v6, 0.0  ;;  %v1038_v38 = vadd.s32 4294967224, %v2655_v59 }
 0x196   : > { %v2383_v13 = vpop.eup %2382  ;;  %v755_v20 = vadd.f32 %v730_v28, %v2638_v51  ;;  %v1007_v47 = vrot.slane %v950_v49, %v3081_v22  ;;  %v1002_v24 = vsel %vm1001_vm7, %v1000_v33, %v995_v63  ;;  %v1014_v27 = vrot.slane %v951_v15, %v3125_v18  ;;  %v3535_v33 = vld [vmem:[#allocation11_spill] sm:$0xff] }
 0x197   : > { %v2385_v57 = vpop.eup %2384  ;;  %v953_v45 = vsub.f32 %v756_v60, %v2979_v19  ;;  %v736_v50 = vmul.f32 0.6931472, %v2383_v13  ;;  %v716_v58 = vpop.xlane.xlu1 %715  ;;  %1712 = vadd.xlane.f32.xlu1 %v1711_v21  ;;  %1709 = vadd.xlane.f32.xlu0 %v3171_v17  ;;  %v1714_v19 = vsel %vm1671_vm6, %v1669_v32, 0.0  ;;  %vm1029_vm6 = vcmask 523712   ;;  %v3536_v32 = vld [vmem:[#allocation12_spill] sm:$0xff] }
 0x198   : > { %v952_v55 = vsub.f32 %v755_v20, %v2983_v3  ;;  %v734_v16 = vmul.f32 0.6931472, %v2385_v57  ;;  %2394 = vlog2.f32 %v716_v58  ;;  %v713_v51 = vpop.xlane.xlu0 %712  ;;  %v1009_v54 = vsel %vm1008_vm9, %v1007_v47, %v1002_v24  ;;  %v3538_v24 = vld [vmem:[#allocation6_spill] sm:$0xff] }
 0x199   : > { %v758_v41 = vadd.f32 %v736_v50, %v2640_v52  ;;  %2396 = vlog2.f32 %v713_v51  ;;  %v3226_v3 = vsub.s32 %v1038_v38, %v2518_v2  ;;  %v1016_v42 = vsel %vm1015_vm10, %v1014_v27, %v1009_v54  ;;  %v3537_v38 = vld [vmem:[#allocation5_spill] sm:$0xff] }
 0x19a   : > { %v2387_v31 = vpop.eup %2386  ;;  %v757_v43 = vadd.f32 %v734_v16, %v2642_v53  ;;  %v1021_v46 = vrot.slane %v952_v55, %v3117_v56  ;;  %v1028_v25 = vrot.slane %v953_v45, %v3208_v11  ;;  %v3238_v8 = vsub.s32 %v1045_v0, %v2518_v2 }
 0x19b   : > { %v2389_v17 = vpop.eup %2388  ;;  %v955_v1 = vsub.f32 %v758_v41, %v3531_v62  ;;  %v740_v30 = vmul.f32 0.6931472, %v2387_v31  ;;  %v3230_v52 = vpop.xlane.xlu1 %944  ;;  %1718 = vadd.xlane.f32.xlu1 %v1717_v35  ;;  %1715 = vadd.xlane.f32.xlu0 %v1714_v19  ;;  %v1059_v21 = vadd.s32 4294967200, %v2655_v59  ;;  %v3244_v40 = vsub.s32 %v1052_v34, %v2518_v2  ;;  %v3539_v41 = vld [vmem:[#allocation13_spill] sm:$0xff] }
 0x19c   : > { %v954_v53 = vsub.f32 %v757_v43, %v3532_v44  ;;  %v738_v61 = vmul.f32 0.6931472, %v2389_v17  ;;  %v942_v4 = vpop.xlane.xlu0 %941  ;;  %v1023_v23 = vsel %vm1022_vm11, %v1021_v46, %v1016_v42  ;;  %v1066_v48 = vadd.s32 4294967192, %v2655_v59  ;;  %v3540_v46 = vld [vmem:[#allocation14_spill] sm:$0xff]  ;;  %v3542_v44 = vld [vmem:[#allocation8_spill] sm:$0xff] }
 0x19d   : > { %v760_v12 = vadd.f32 %v740_v30, %v3533_v29  ;;  %v1030_v63 = vsel %vm1029_vm6, %v1028_v25, %v1023_v23  ;;  %v1042_v60 = vrot.slane %v955_v1, %v3226_v3  ;;  %v1080_v45 = vadd.s32 4294967176, %v2655_v59  ;;  %v3541_v30 = vld [vmem:[#allocation7_spill] sm:$0xff] }
 0x19e   : > { %v2391_v6 = vpop.eup %2390  ;;  %v759_v36 = vadd.f32 %v738_v61, %v3534_v39  ;;  %v1035_v15 = vrot.slane %v954_v53, %v3167_v26  ;;  %v1073_v50 = vadd.s32 4294967184, %v2655_v59  ;;  %v3258_v16 = vsub.s32 %v1059_v21, %v2518_v2 }
 0x19f   : > { %v2393_v9 = vpop.eup %2392  ;;  %v957_v49 = vsub.f32 %v760_v12, %v3535_v33  ;;  %v744_v28 = vmul.f32 0.6931472, %v2391_v6  ;;  %v1239_v10 = vpop.xlane.xlu1 %1238  ;;  %v3261_v51 = vsub.s32 %v1066_v48, %v2518_v2  ;;  %v3270_v25 = vsub.s32 %v1080_v45, %v2518_v2 }
 0x1a0   : > { %v956_v13 = vsub.f32 %v759_v36, %v3536_v32  ;;  %v742_v20 = vmul.f32 0.6931472, %v2393_v9  ;;  %v1236_v35 = vpop.xlane.xlu0 %1235  ;;  %v1037_v47 = vsel %vm1036_vm12, %v1035_v15, %v1030_v63  ;;  %v3274_v61 = vsub.s32 %v1073_v50, %v2518_v2 }
 0x1a1   : > { %v762_v57 = vadd.f32 %v744_v28, %v3537_v38  ;;  %v1044_v43 = vsel %vm1043_vm13, %v1042_v60, %v1037_v47  ;;  %v1056_v59 = vrot.slane %v957_v49, %v3244_v40  ;;  %vm1085_vm8 = vcmask 1048512  }
 0x1a2   : > { %v2395_v58 = vpop.eup %2394  ;;  %v761_v27 = vadd.f32 %v742_v20, %v3538_v24  ;;  %v1049_v55 = vrot.slane %v956_v13, %v3238_v8 }
 0x1a3   : > { %v2397_v54 = vpop.eup %2396  ;;  %v959_v19 = vsub.f32 %v762_v57, %v3539_v41  ;;  %v748_v0 = vmul.f32 0.6931472, %v2395_v58  ;;  %v1245_v31 = vpop.xlane.xlu1 %1244 }
 0x1a4   : > { %v958_v34 = vsub.f32 %v761_v27, %v3540_v46  ;;  %v746_v17 = vmul.f32 0.6931472, %v2397_v54  ;;  %v1242_v62 = vpop.xlane.xlu0 %1241  ;;  %v1051_v1 = vsel %vm1050_vm14, %v1049_v55, %v1044_v43 }
 0x1a5   : > { %v764_v42 = vadd.f32 %v748_v0, %v3541_v30  ;;  %v1058_v21 = vsel %vm1057_vm15, %v1056_v59, %v1051_v1  ;;  %v1070_v6 = vrot.slane %v959_v19, %v3261_v51 }
 0x1a6   : > { %v763_v53 = vadd.f32 %v746_v17, %v3542_v44  ;;  %v1063_v23 = vrot.slane %v958_v34, %v3258_v16 }
 0x1a7   : > { %v961_v29 = vsub.f32 %v764_v42, %v3230_v52  ;;  %v1251_v12 = vpop.xlane.xlu1 %1250 }
 0x1a8   : > { %v960_v39 = vsub.f32 %v763_v53, %v942_v4  ;;  %v1248_v36 = vpop.xlane.xlu0 %1247  ;;  %v1065_v15 = vsel %vm1064_vm1, %v1063_v23, %v1058_v21 }
 0x1a9   : > { %v1084_v48 = vrot.slane %v961_v29, %v3270_v25  ;;  %v1072_v33 = vsel %vm1071_vm2, %v1070_v6, %v1065_v15  ;;  %v3543_v15 = vld [vmem:[#allocation2_spill] sm:$0xff] }
 0x1aa   : > { %v1077_v2 = vrot.slane %v960_v39, %v3274_v61 }
 0x1ab   : > { %v1257_v9 = vpop.xlane.xlu1 %1256 }
 0x1ac   : > { %v1254_v52 = vpop.xlane.xlu0 %1253  ;;  %v1079_v4 = vsel %vm1078_vm5, %v1077_v2, %v1072_v33 }
 0x1ad   : > { %v1086_v49 = vsel %vm1085_vm8, %v1084_v48, %v1079_v4 }
 0x1ae   : > { %1088 = vst [vmem:[%s534_s22] sm:$0x1] %v1086_v49 }
 0x1af   : > { %v1263_v28 = vpop.xlane.xlu1 %1262 }
 0x1b0   : > { %v1260_v63 = vpop.xlane.xlu0 %1259 }
 0x1b3   : > { %v1269_v60 = vpop.xlane.xlu1 %1268 }
 0x1b4   : > { %v1266_v32 = vpop.xlane.xlu0 %1265 }
 0x1b7   : > { %v1275_v13 = vpop.xlane.xlu1 %1274 }
 0x1b8   : > { %v1272_v20 = vpop.xlane.xlu0 %1271 }
 0x1bb   : > { %v1281_v47 = vpop.xlane.xlu1 %1280 }
 0x1bc   : > { %v1278_v38 = vpop.xlane.xlu0 %1277 }
 0x1bf   : > { %v1293_v57 = vpop.permute.xlu1 %1292 }
 0x1c0   : > { %v1367_v45 = vmul.f32 %v1293_v57, %v1239_v10  ;;  %v1289_v50 = vpop.permute.xlu0 %1288 }
 0x1c1   : > { %v1366_v58 = vmul.f32 %v1289_v50, %v1236_v35 }
 0x1c2   : > { %1402 = vperm.xlu1 %2333, %v1367_v45  }
 0x1c3   : > { %1399 = vperm.xlu0 %2332, %v1366_v58   ;;  %v1297_v24 = vpop.permute.xlu1 %1296 }
 0x1c4   : > { %v1368_v27 = vmul.f32 %v1297_v24, %v1242_v62  ;;  %v1305_v55 = vpop.permute.xlu0 %1304 }
 0x1c5   : > { %v1370_v41 = vmul.f32 %v1305_v55, %v1248_v36 }
 0x1c6   : > { %1405 = vperm.xlu1 %2333, %v1368_v27  }
 0x1c7   : > { %v1301_v54 = vpop.permute.xlu1 %1300 }
 0x1c8   : > { %v1369_v19 = vmul.f32 %v1301_v54, %v1245_v31  ;;  %v1313_v0 = vpop.permute.xlu0 %1312 }
 0x1c9   : > { %v1372_v59 = vmul.f32 %v1313_v0, %v1254_v52 }
 0x1ca   : > { %1408 = vperm.xlu0 %2332, %v1369_v19   ;;  %1411 = vperm.xlu1 %2333, %v1370_v41  }
 0x1cb   : > { %v1309_v43 = vpop.permute.xlu1 %1308 }
 0x1cc   : > { %v1371_v46 = vmul.f32 %v1309_v43, %v1251_v12  ;;  %v1321_v34 = vpop.permute.xlu0 %1320 }
 0x1cd   : > { %v1374_v35 = vmul.f32 %v1321_v34, %v1260_v63 }
 0x1ce   : > { %1414 = vperm.xlu0 %2332, %v1371_v46   ;;  %1417 = vperm.xlu1 %2333, %v1372_v59  }
 0x1cf   : > { %v1317_v10 = vpop.permute.xlu1 %1316 }
 0x1d0   : > { %v1373_v17 = vmul.f32 %v1317_v10, %v1257_v9  ;;  %v1329_v1 = vpop.permute.xlu0 %1328 }
 0x1d1   : > { %v1376_v30 = vmul.f32 %v1329_v1, %v1266_v32 }
 0x1d2   : > { %1420 = vperm.xlu0 %2332, %v1373_v17   ;;  %1423 = vperm.xlu1 %2333, %v1374_v35  }
 0x1d3   : > { %v1325_v62 = vpop.permute.xlu1 %1324 }
 0x1d4   : > { %v1375_v42 = vmul.f32 %v1325_v62, %v1263_v28  ;;  %v1337_v44 = vpop.permute.xlu0 %1336 }
 0x1d5   : > { %v1378_v53 = vmul.f32 %v1337_v44, %v1272_v20 }
 0x1d6   : > { %1426 = vperm.xlu0 %2332, %v1375_v42   ;;  %1429 = vperm.xlu1 %2333, %v1376_v30  }
 0x1d7   : > { %v1333_v31 = vpop.permute.xlu1 %1332 }
 0x1d8   : > { %v1377_v23 = vmul.f32 %v1333_v31, %v1269_v60  ;;  %v1345_v29 = vpop.permute.xlu0 %1344 }
 0x1d9   : > { %v1380_v21 = vmul.f32 %v1345_v29, %v1278_v38 }
 0x1da   : > { %1432 = vperm.xlu0 %2332, %v1377_v23   ;;  %1435 = vperm.xlu1 %2333, %v1378_v53  }
 0x1db   : > { %v1341_v12 = vpop.permute.xlu1 %1340 }
 0x1dc   : > { %v1379_v6 = vmul.f32 %v1341_v12, %v1275_v13 }
 0x1de   : > { %1438 = vperm.xlu0 %2332, %v1379_v6   ;;  %1441 = vperm.xlu1 %2333, %v1380_v21  }
 0x1df   : > { %v1349_v39 = vpop.permute.xlu1 %1348 }
 0x1e0   : > { %v3290_v36 = vmul.f32 %v1349_v39, %v1281_v47 }
 0x1e2   : > { %1726 = vbcast.lane.b32.xlu0 %v3543_v15, 256  ;;  %1730 = vbcast.lane.b32.xlu1 %v3543_v15, 264 }
 0x1e6   : > { %1742 = vbcast.lane.b32.xlu0 %v3543_v15, 288  ;;  %1734 = vbcast.lane.b32.xlu1 %v3543_v15, 272 }
 0x1ea   : > { %1750 = vbcast.lane.b32.xlu0 %v3543_v15, 304  ;;  %1738 = vbcast.lane.b32.xlu1 %v3543_v15, 280 }
 0x1ee   : > { %1758 = vbcast.lane.b32.xlu0 %v3543_v15, 320  ;;  %1746 = vbcast.lane.b32.xlu1 %v3543_v15, 296 }
 0x1f2   : > { %1766 = vbcast.lane.b32.xlu0 %v3543_v15, 336  ;;  %1754 = vbcast.lane.b32.xlu1 %v3543_v15, 312 }
 0x1f6   : > { %1774 = vbcast.lane.b32.xlu0 %v3543_v15, 352  ;;  %1762 = vbcast.lane.b32.xlu1 %v3543_v15, 328 }
 0x1fa   : > { %1782 = vbcast.lane.b32.xlu0 %v3543_v15, 368  ;;  %1770 = vbcast.lane.b32.xlu1 %v3543_v15, 344 }
 0x1fe   : > { %1778 = vbcast.lane.b32.xlu1 %v3543_v15, 360 }
 0x202   : > { %1786 = vbcast.lane.b32.xlu1 %v3543_v15, 376 }
 0x208   : > { %v3308_v48 = vpop.xlane.xlu0 %1673 }
 0x20c   : > { %v3310_v2 = vpop.xlane.xlu0 %1679 }
 0x210   : > { %v1677_v9 = vpop.xlane.xlu1 %1676  ;;  %v3312_v33 = vpop.xlane.xlu0 %1682 }
 0x214   : > { %v3314_v52 = vpop.xlane.xlu1 %1688  ;;  %v3316_v4 = vpop.xlane.xlu0 %1685 }
 0x218   : > { %v3318_v49 = vpop.xlane.xlu1 %1694  ;;  %v3320_v28 = vpop.xlane.xlu0 %1691 }
 0x21c   : > { %v3322_v63 = vpop.xlane.xlu1 %1700  ;;  %v3324_v60 = vpop.xlane.xlu0 %1697 }
 0x220   : > { %v3326_v32 = vpop.xlane.xlu1 %1706  ;;  %v3328_v13 = vpop.xlane.xlu0 %1703 }
 0x224   : > { %v3330_v20 = vpop.xlane.xlu1 %1712  ;;  %v3332_v47 = vpop.xlane.xlu0 %1709 }
 0x228   : > { %v3334_v38 = vpop.xlane.xlu1 %1718  ;;  %v3336_v57 = vpop.xlane.xlu0 %1715 }
 0x241   : > { %v1403_v45 = vpop.permute.xlu1 %1402 }
 0x242   : > { %v1453_v50 = vrot.slane %v1403_v45, %v2993_v5  ;;  %v1400_v58 = vpop.permute.xlu0 %1399 }
 0x243   : > { %v1449_v24 = vrot.slane %v1400_v58, %v3021_v37 }
 0x245   : > { %v1454_v27 = vsel %vm987_vm3, %v1453_v50, %v1449_v24  ;;  %v1406_v55 = vpop.permute.xlu1 %1405 }
 0x246   : > { %v1458_v54 = vrot.slane %v1406_v55, %v3032_v14 }
 0x248   : > { %v1459_v41 = vsel %vm994_vm4, %v1458_v54, %v1454_v27 }
 0x249   : > { %v1412_v19 = vpop.permute.xlu1 %1411  ;;  %v1409_v0 = vpop.permute.xlu0 %1408 }
 0x24a   : > { %v1468_v43 = vrot.slane %v1412_v19, %v3081_v22  ;;  %v1463_v59 = vrot.slane %v1409_v0, %v3035_v7 }
 0x24c   : > { %v1464_v46 = vsel %vm1001_vm7, %v1463_v59, %v1459_v41 }
 0x24d   : > { %v1418_v34 = vpop.permute.xlu1 %1417  ;;  %v1469_v10 = vsel %vm1008_vm9, %v1468_v43, %v1464_v46  ;;  %v1415_v35 = vpop.permute.xlu0 %1414 }
 0x24e   : > { %v1478_v17 = vrot.slane %v1418_v34, %v3117_v56  ;;  %v1473_v1 = vrot.slane %v1415_v35, %v3125_v18 }
 0x250   : > { %v1474_v62 = vsel %vm1015_vm10, %v1473_v1, %v1469_v10 }
 0x251   : > { %v1424_v30 = vpop.permute.xlu1 %1423  ;;  %v1479_v42 = vsel %vm1022_vm11, %v1478_v17, %v1474_v62  ;;  %v1421_v44 = vpop.permute.xlu0 %1420 }
 0x252   : > { %v1488_v31 = vrot.slane %v1424_v30, %v3167_v26  ;;  %v1483_v53 = vrot.slane %v1421_v44, %v3208_v11 }
 0x254   : > { %v1484_v23 = vsel %vm1029_vm6, %v1483_v53, %v1479_v42 }
 0x255   : > { %v1430_v29 = vpop.permute.xlu1 %1429  ;;  %v1489_v12 = vsel %vm1036_vm12, %v1488_v31, %v1484_v23  ;;  %v1427_v21 = vpop.permute.xlu0 %1426 }
 0x256   : > { %v1498_v6 = vrot.slane %v1430_v29, %v3238_v8  ;;  %v1493_v39 = vrot.slane %v1427_v21, %v3226_v3 }
 0x258   : > { %v1494_v15 = vsel %vm1043_vm13, %v1493_v39, %v1489_v12 }
 0x259   : > { %v1436_v45 = vpop.permute.xlu1 %1435  ;;  %v1499_v50 = vsel %vm1050_vm14, %v1498_v6, %v1494_v15  ;;  %v1433_v58 = vpop.permute.xlu0 %1432 }
 0x25a   : > { %v1508_v24 = vrot.slane %v1436_v45, %v3258_v16  ;;  %v1503_v27 = vrot.slane %v1433_v58, %v3244_v40 }
 0x25c   : > { %v1504_v55 = vsel %vm1057_vm15, %v1503_v27, %v1499_v50 }
 0x25d   : > { %v1442_v54 = vpop.permute.xlu1 %1441  ;;  %v1509_v41 = vsel %vm1064_vm1, %v1508_v24, %v1504_v55  ;;  %v1439_v19 = vpop.permute.xlu0 %1438 }
 0x25e   : > { %v1518_v0 = vrot.slane %v1442_v54, %v3274_v61  ;;  %v1513_v43 = vrot.slane %v1439_v19, %v3261_v51 }
 0x260   : > { %v1514_v59 = vsel %vm1071_vm2, %v1513_v43, %v1509_v41 }
 0x261   : > { %v1731_v46 = vpop.permute.xlu1 %1730  ;;  %v1727_v34 = vpop.permute.xlu0 %1726  ;;  %v3367_v10 = vsel %vm1078_vm5, %v1518_v0, %v1514_v59 }
 0x262   : > { %v1805_v35 = vmul.f32 %v1731_v46, %v1677_v9  ;;  %v1804_v17 = vmul.f32 %v1727_v34, %v3308_v48 }
 0x264   : > { %1840 = vperm.xlu1 %2333, %v1805_v35   ;;  %1837 = vperm.xlu0 %2332, %v1804_v17  }
 0x265   : > { %v1735_v1 = vpop.permute.xlu1 %1734  ;;  %v1743_v62 = vpop.permute.xlu0 %1742 }
 0x266   : > { %v1806_v30 = vmul.f32 %v1735_v1, %v3310_v2  ;;  %v1808_v31 = vmul.f32 %v1743_v62, %v3316_v4 }
 0x268   : > { %1843 = vperm.xlu0 %2332, %v1806_v30  }
 0x269   : > { %v1739_v42 = vpop.permute.xlu1 %1738  ;;  %v1751_v44 = vpop.permute.xlu0 %1750 }
 0x26a   : > { %v1807_v53 = vmul.f32 %v1739_v42, %v3312_v33  ;;  %v1810_v9 = vmul.f32 %v1751_v44, %v3320_v28 }
 0x26c   : > { %1846 = vperm.xlu1 %2333, %v1807_v53   ;;  %1849 = vperm.xlu0 %2332, %v1808_v31  }
 0x26d   : > { %v1747_v23 = vpop.permute.xlu1 %1746  ;;  %v1759_v29 = vpop.permute.xlu0 %1758 }
 0x26e   : > { %v1809_v48 = vmul.f32 %v1747_v23, %v3314_v52  ;;  %v1812_v2 = vmul.f32 %v1759_v29, %v3324_v60 }
 0x270   : > { %1852 = vperm.xlu1 %2333, %v1809_v48   ;;  %1855 = vperm.xlu0 %2332, %v1810_v9  }
 0x271   : > { %v1755_v12 = vpop.permute.xlu1 %1754  ;;  %v1767_v21 = vpop.permute.xlu0 %1766 }
 0x272   : > { %v1811_v6 = vmul.f32 %v1755_v12, %v3318_v49  ;;  %v1814_v39 = vmul.f32 %v1767_v21, %v3328_v13 }
 0x274   : > { %1858 = vperm.xlu1 %2333, %v1811_v6   ;;  %1861 = vperm.xlu0 %2332, %v1812_v2  }
 0x275   : > { %v1763_v4 = vpop.permute.xlu1 %1762  ;;  %v1775_v33 = vpop.permute.xlu0 %1774 }
 0x276   : > { %v1813_v15 = vmul.f32 %v1763_v4, %v3322_v63  ;;  %v1816_v52 = vmul.f32 %v1775_v33, %v3332_v47 }
 0x278   : > { %1864 = vperm.xlu1 %2333, %v1813_v15   ;;  %1867 = vperm.xlu0 %2332, %v1814_v39  }
 0x279   : > { %v1771_v28 = vpop.permute.xlu1 %1770  ;;  %v1783_v50 = vpop.permute.xlu0 %1782 }
 0x27a   : > { %v1815_v45 = vmul.f32 %v1771_v28, %v3326_v32  ;;  %v1818_v49 = vmul.f32 %v1783_v50, %v3336_v57 }
 0x27c   : > { %1870 = vperm.xlu1 %2333, %v1815_v45   ;;  %1873 = vperm.xlu0 %2332, %v1816_v52  }
 0x27d   : > { %v1779_v60 = vpop.permute.xlu1 %1778 }
 0x27e   : > { %v1817_v58 = vmul.f32 %v1779_v60, %v3330_v20 }
 0x280   : > { %1876 = vperm.xlu1 %2333, %v1817_v58   ;;  %1879 = vperm.xlu0 %2332, %v1818_v49  }
 0x281   : > { %v1787_v13 = vpop.permute.xlu1 %1786 }
 0x282   : > { %v1819_v63 = vmul.f32 %v1787_v13, %v3334_v38 }
 0x284   : > { %1444 = vperm.xlu1 %2333, %v3290_v36   ;;  %1882 = vperm.xlu0 %2332, %v1819_v63  }
 0x2e3   : > { %v1838_v24 = vpop.permute.xlu0 %1837  ;;  %v1841_v47 = vpop.permute.xlu1 %1840 }
 0x2e4   : > { %v1891_v32 = vrot.slane %v1841_v47, %v2993_v5  ;;  %v1887_v55 = vrot.slane %v1838_v24, %v3021_v37 }
 0x2e6   : > { %v1892_v20 = vsel %vm987_vm3, %v1891_v32, %v1887_v55 }
 0x2e7   : > { %v1844_v27 = vpop.permute.xlu0 %1843 }
 0x2e8   : > { %v1896_v54 = vrot.slane %v1844_v27, %v3032_v14 }
 0x2ea   : > { %v1897_v38 = vsel %vm994_vm4, %v1896_v54, %v1892_v20 }
 0x2eb   : > { %v1847_v57 = vpop.permute.xlu1 %1846  ;;  %v1850_v41 = vpop.permute.xlu0 %1849 }
 0x2ec   : > { %v1901_v19 = vrot.slane %v1847_v57, %v3035_v7  ;;  %v1906_v36 = vrot.slane %v1850_v41, %v3081_v22 }
 0x2ee   : > { %v1902_v0 = vsel %vm1001_vm7, %v1901_v19, %v1897_v38 }
 0x2ef   : > { %v1853_v43 = vpop.permute.xlu1 %1852  ;;  %v1856_v59 = vpop.permute.xlu0 %1855  ;;  %v1907_v37 = vsel %vm1008_vm9, %v1906_v36, %v1902_v0 }
 0x2f0   : > { %v1911_v5 = vrot.slane %v1853_v43, %v3125_v18  ;;  %v1916_v14 = vrot.slane %v1856_v59, %v3117_v56 }
 0x2f2   : > { %v1912_v46 = vsel %vm1015_vm10, %v1911_v5, %v1907_v37 }
 0x2f3   : > { %v1859_v34 = vpop.permute.xlu1 %1858  ;;  %v1862_v35 = vpop.permute.xlu0 %1861  ;;  %v1917_v17 = vsel %vm1022_vm11, %v1916_v14, %v1912_v46 }
 0x2f4   : > { %v1921_v7 = vrot.slane %v1859_v34, %v3208_v11  ;;  %v1926_v22 = vrot.slane %v1862_v35, %v3167_v26 }
 0x2f6   : > { %v1922_v1 = vsel %vm1029_vm6, %v1921_v7, %v1917_v17 }
 0x2f7   : > { %v1865_v62 = vpop.permute.xlu1 %1864  ;;  %v1868_v30 = vpop.permute.xlu0 %1867  ;;  %v1927_v42 = vsel %vm1036_vm12, %v1926_v22, %v1922_v1 }
 0x2f8   : > { %v1931_v18 = vrot.slane %v1865_v62, %v3226_v3  ;;  %v1936_v56 = vrot.slane %v1868_v30, %v3238_v8 }
 0x2fa   : > { %v1932_v44 = vsel %vm1043_vm13, %v1931_v18, %v1927_v42 }
 0x2fb   : > { %v1871_v31 = vpop.permute.xlu1 %1870  ;;  %v1874_v11 = vpop.permute.xlu0 %1873  ;;  %v1937_v26 = vsel %vm1050_vm14, %v1936_v56, %v1932_v44 }
 0x2fc   : > { %v1941_v53 = vrot.slane %v1871_v31, %v3244_v40  ;;  %v1946_v23 = vrot.slane %v1874_v11, %v3258_v16 }
 0x2fe   : > { %v1942_v29 = vsel %vm1057_vm15, %v1941_v53, %v1937_v26 }
 0x2ff   : > { %v1877_v9 = vpop.permute.xlu1 %1876  ;;  %v1880_v3 = vpop.permute.xlu0 %1879  ;;  %v1947_v8 = vsel %vm1064_vm1, %v1946_v23, %v1942_v29 }
 0x300   : > { %v1951_v48 = vrot.slane %v1877_v9, %v3261_v51  ;;  %v1956_v12 = vrot.slane %v1880_v3, %v3274_v61 }
 0x302   : > { %v1952_v21 = vsel %vm1071_vm2, %v1951_v48, %v1947_v8 }
 0x303   : > { %v1445_v2 = vpop.permute.xlu1 %1444  ;;  %v1883_v6 = vpop.permute.xlu0 %1882  ;;  %v1957_v51 = vsel %vm1078_vm5, %v1956_v12, %v1952_v21 }
 0x304   : > { %v1523_v40 = vrot.slane %v1445_v2, %v3270_v25  ;;  %v1961_v16 = vrot.slane %v1883_v6, %v3270_v25 }
 0x306   : > { %v1524_v61 = vsel %vm1085_vm8, %v1523_v40, %v3367_v10  ;;  %v1962_v4 = vsel %vm1085_vm8, %v1961_v16, %v1957_v51 }
 0x307   : > { %1526 = vst [vmem:[%s541_s25] sm:$0x1] %v1524_v61  ;;  %1964 = vst [vmem:[%s548_s28] sm:$0x1] %v1962_v4 }
 0x308 PF: > { %s19_s9 = sadd.s32 1, %s2436_s9   ;;  %s3544_s27 = smov %s2428_s29 }
 0x309   : > { %p16_p8 = scmp.ge.s32.totalorder %s19_s9, 6   ;;  %s3545_s28 = smov %s2432_s30 }
 0x30a   : > { %s3546_s29 = smov %s3549_s10  ;;  %s3547_s30 = smov %s3553_s11 }
 0x30b   :  { %18 = sbr.rel (!%p16_p8) target bundleno = 3 (0x3), region = 113 }

</bundles_post_ra>
